<compile_context>
chip_gen: v7x
topology: tpu7x:2x2x1
jax: 0.10.0
libtpu: 0.0.40
codegen_flags: <defaults>
</compile_context>

<pallas_src>
import functools

import jax
import jax.numpy as jnp
from jax.experimental import pallas as pl
from jax.experimental.pallas import tpu as pltpu

ENT_SIZE = 8  # stands in for onmt.ENT_SIZE


# ----------------------------------------------------------------------------
# Pallas kernel: scoring, segmented (per-chunk) + chunk masked softmaxes
# (NaN-safe), chunk inflation, context, fused split output projection + tanh.
# All big tensors are length-major: (S, TB, D) / (NC, TB, D) / (S, TB).
# ----------------------------------------------------------------------------
def _hier_attn_kernel(src_ref, chunks_ref, mem_ref, pos_ref,
                      umask_ref, cmask_ref,
                      wu_ref, wc_ref, woutc_ref, wouts_ref,
                      attn_ref, av_ref, ac_ref, au_ref,
                      *, nc, ent, approx_recip):
    f32 = jnp.float32
    src = src_ref[...].astype(f32)                                   # (TB, D)

    # Query projections + the src-half of the fused output projection:
    # single (TB, *) MXU matmuls against unbatched, pinned weights.
    qu = jnp.dot(src, wu_ref[...], preferred_element_type=f32)       # (TB, Du)
    qc = jnp.dot(src, wc_ref[...], preferred_element_type=f32)       # (TB, D)
    proj_s = jnp.dot(src, wouts_ref[...], preferred_element_type=f32)  # (TB, D)

    # tgt_len == 1: per-batch mat-vec scores on the VPU (broadcast-mul + lane
    # reduce); f32 upcast folded into the multiply (inputs may be bf16).
    su = jnp.sum(pos_ref[...].astype(f32) * qu[None, :, :], axis=-1)     # (S, TB)
    sc = jnp.sum(chunks_ref[...].astype(f32) * qc[None, :, :], axis=-1)  # (NC, TB)

    tb = su.shape[1]
    su3 = su.reshape(nc, ent, tb)                     # free leading-dim split
    uvalid = umask_ref[...].reshape(nc, ent, tb) == 0  # True = keep
    cvalid = cmask_ref[...] == 0                      # (NC, TB)

    neg = jnp.float32(-1e30)

    # --- per-chunk (ENT_SIZE units) masked softmax, segmented, NaN-free -----
    su_m = jnp.where(uvalid, su3, neg)
    pcm = jnp.max(su_m, axis=1, keepdims=True)        # (NC, 1, TB) segmented max
    eu = jnp.where(uvalid, jnp.exp(su_m - pcm), 0.0)
    du_sum = jnp.sum(eu, axis=1, keepdims=True)       # (NC, 1, TB)
    # fully-masked chunk -> exact zeros (torch path: softmax -> NaN -> fill 0)
    au3 = eu * pl.reciprocal(jnp.where(du_sum > 0.0, du_sum, 1.0),
                             approx=approx_recip)     # (NC, E, TB)

    # --- chunk-level masked softmax ------------------------------------------
    sc_m = jnp.where(cvalid, sc, neg)
    cmax = jnp.max(sc_m, axis=0, keepdims=True)       # (1, TB)
    ec = jnp.where(cvalid, jnp.exp(sc_m - cmax), 0.0)
    csum = jnp.sum(ec, axis=0, keepdims=True)
    ac = ec * pl.reciprocal(jnp.where(csum > 0.0, csum, 1.0),
                            approx=approx_recip)      # (NC, TB)

    # --- inflate chunk weights over their units, combine, context ------------
    av3 = ac[:, None, :] * au3                        # (NC, E, TB)  repeat_interleave
    av = av3.reshape(nc * ent, tb)                    # (S, TB), free merge
    c = jnp.sum(av[:, :, None] * mem_ref[...].astype(f32), axis=0)   # (TB, D)

    # fused output projection: tanh([c; src] @ Wout^T) == tanh(c@Wc + src@Ws)
    attn = jnp.tanh(jnp.dot(c, woutc_ref[...], preferred_element_type=f32) + proj_s)

    attn_ref[...] = attn.astype(attn_ref.dtype)
    av_ref[...] = av.astype(av_ref.dtype)
    ac_ref[...] = ac.astype(ac_ref.dtype)
    au_ref[...] = au3.reshape(nc * ent, tb).astype(au_ref.dtype)


# ----------------------------------------------------------------------------
# Batch-tile / VMEM sizing
# ----------------------------------------------------------------------------
def _vmem_capacity_bytes():
    try:
        return int(pltpu.get_tpu_info().vmem_capacity_bytes)
    except Exception:
        return 64 * 1024 * 1024   # conservative fallback (v7x per-TC VMEM)


def _pick_batch_tile(B, S, NC, D, Du, kv_bytes, vmem_cap):
    budget = int(0.45 * vmem_cap)
    fixed = 8 * (D * Du + 3 * D * D)                     # pinned weights (double-buffered, f32)
    per_col = (2 * kv_bytes * (S * (D + Du) + NC * D)    # double-buffered kv input tiles
               + 12 * S * max(D, Du)                     # f32 upcast / product temporaries
               + 4 * (4 * S + 4 * NC + 6 * D))           # masks, outputs, src
    fit = max(8, (budget - fixed) // max(per_col, 1))
    if B <= 128:
        return B                      # full batch: block == full extent, always legal
    # For B > 128, blocks whose LAST dim is the batch tile must use a multiple
    # of 128 (lane-dense stores + (8,128) layout rule) unless they cover all of B.
    tb = min(fit, 512, B)
    if B >= 4 * 128:                  # keep >=4 grid steps (v7x: 2 TCs, pipeline overlap)
        tb = min(tb, -(-B // 4))
    tb = max(128, (tb // 128) * 128)
    return B if tb >= B else tb


# ----------------------------------------------------------------------------
# Wrapper (JAX glue: tiny mask re-layouts, weight split, grid / BlockSpecs)
# ----------------------------------------------------------------------------
def hierarchical_attention(source, memory_bank_tuple, params, ent_size=ENT_SIZE,
                           kv_dtype=jnp.bfloat16, approx_reciprocal=True):
    chunks, mem, pos, umask, cmask = memory_bank_tuple
    f32 = jnp.float32

    # Heavy operands keep their original (len, batch, dim) layout -> no wrapper
    # transposes of the big arrays.  Only a dtype cast if not already kv_dtype
    # (no-op when the caller already supplies bf16).
    chunks = chunks.astype(kv_dtype)        # (NC, B, D)
    mem = mem.astype(kv_dtype)              # (S,  B, D)
    pos = pos.astype(kv_dtype)              # (S,  B, Du)
    src = source.astype(f32)                # (B, D)

    NC, B, D = chunks.shape
    S = mem.shape[0]
    Du = pos.shape[2]
    E = ent_size
    assert S == NC * E

    # Tiny mask re-layouts (negligible HBM traffic).
    umask_sb = jnp.transpose(umask, (0, 2, 1)).reshape(S, B).astype(jnp.int32)  # (S, B)
    cmask_nb = jnp.transpose(cmask[0], (1, 0)).astype(jnp.int32)                # (NC, B)

    # torch Linear weights are (out, in); pre-transpose once and split
    # linear_out into the c-half and the src-half.
    wu_t = params['wu'].T.astype(f32)               # (D, Du)
    wc_t = params['wc'].T.astype(f32)               # (D, D)
    woutc_t = params['wout'][:, :D].T.astype(f32)   # (D, D)  acts on c
    wouts_t = params['wout'][:, D:].T.astype(f32)   # (D, D)  acts on src

    kv_bytes = jnp.dtype(kv_dtype).itemsize
    vmem_cap = _vmem_capacity_bytes()
    TB = _pick_batch_tile(B, S, NC, D, Du, kv_bytes, vmem_cap)
    grid = (pl.cdiv(B, TB),)

    kernel = functools.partial(_hier_attn_kernel, nc=NC, ent=E,
                               approx_recip=approx_reciprocal)

    pin2 = lambda i: (0, 0)
    in_specs = [
        pl.BlockSpec((TB, D), lambda i: (i, 0)),          # src (batch-major)
        pl.BlockSpec((NC, TB, D), lambda i: (0, i, 0)),   # chunks (length-major)
        pl.BlockSpec((S, TB, D), lambda i: (0, i, 0)),    # memory bank
        pl.BlockSpec((S, TB, Du), lambda i: (0, i, 0)),   # positional embeddings
        pl.BlockSpec((S, TB), lambda i: (0, i)),          # unit mask
        pl.BlockSpec((NC, TB), lambda i: (0, i)),         # chunk mask
        pl.BlockSpec((D, Du), pin2),                      # wu^T   (pinned constant)
        pl.BlockSpec((D, D), pin2),                       # wc^T
        pl.BlockSpec((D, D), pin2),                       # wout_c^T
        pl.BlockSpec((D, D), pin2),                       # wout_s^T
    ]
    out_specs = (
        pl.BlockSpec((TB, D), lambda i: (i, 0)),          # attn_h
        pl.BlockSpec((S, TB), lambda i: (0, i)),          # align_vectors (length-major)
        pl.BlockSpec((NC, TB), lambda i: (0, i)),         # align_chunks
        pl.BlockSpec((S, TB), lambda i: (0, i)),          # align_units
    )
    out_shape = (
        jax.ShapeDtypeStruct((B, D), f32),
        jax.ShapeDtypeStruct((S, B), f32),
        jax.ShapeDtypeStruct((NC, B), f32),
        jax.ShapeDtypeStruct((S, B), f32),
    )

    attn_h, av_sb, ac_nb, au_sb = pl.pallas_call(
        kernel,
        grid=grid,
        in_specs=in_specs,
        out_specs=out_specs,
        out_shape=out_shape,
        compiler_params=pltpu.CompilerParams(
            dimension_semantics=("parallel",),
            vmem_limit_bytes=int(0.8 * vmem_cap)),
    )(src, chunks, mem, pos, umask_sb, cmask_nb, wu_t, wc_t, woutc_t, wouts_t)

    # Small output re-layouts back to the torch-facing (batch, ...) shapes.
    ret = {'': av_sb.T, '_align_chunks': ac_nb.T, '_align_units': au_sb.T}
    return attn_h, ret


# ----------------------------------------------------------------------------
# Pure-JAX reference (mirrors the torch code path for verification)
# ----------------------------------------------------------------------------
def hierarchical_attention_reference(source, memory_bank_tuple, params, ent_size=ENT_SIZE):
    chunks, mem, pos, umask, cmask = memory_bank_tuple
    f32 = jnp.float32
    chunks = jnp.swapaxes(chunks, 0, 1).astype(f32)
    mem = jnp.swapaxes(mem, 0, 1).astype(f32)
    pos = jnp.swapaxes(pos, 0, 1).astype(f32)
    umask = jnp.swapaxes(umask, 0, 1)
    cmask = jnp.swapaxes(cmask, 0, 1)
    B, S, D = mem.shape
    src = source[:, None, :].astype(f32)

    qu = src @ params['wu'].T
    align_units = jnp.einsum('btd,bsd->bts', qu, pos)[:, 0]      # (B, S)
    qc = src @ params['wc'].T
    align_chunks = jnp.einsum('btd,bnd->btn', qc, chunks)        # (B, 1, NC)

    au = align_units.reshape(B, -1, ent_size)
    au = jnp.where(umask, -jnp.inf, au)
    m = jnp.max(au, axis=-1, keepdims=True)
    e = jnp.exp(au - m)
    au_sm = e / jnp.sum(e, axis=-1, keepdims=True)
    nan_rows = jnp.isnan(au_sm).sum(axis=2) != 0
    au_sm = jnp.where(nan_rows[..., None], 0.0, au_sm)
    au_flat = au_sm.reshape(B, 1, S)

    ac = jnp.where(cmask, -jnp.inf, align_chunks)
    mc = jnp.max(ac, axis=-1, keepdims=True)
    ec = jnp.exp(ac - mc)
    ac_sm = ec / jnp.sum(ec, axis=-1, keepdims=True)

    ac_infl = jnp.repeat(ac_sm, ent_size, axis=-1)
    av = ac_infl * au_flat
    c = jnp.einsum('bts,bsd->btd', av, mem)
    concat = jnp.concatenate([c, src], axis=2).reshape(B, 2 * D)
    attn_h = jnp.tanh(concat @ params['wout'].T)
    return attn_h, av[:, 0], ac_sm[:, 0], au_flat[:, 0]


def init_params(key, chunks_dim, units_dim):
    k1, k2, k3 = jax.random.split(key, 3)
    wu = jax.random.normal(k1, (units_dim, chunks_dim), jnp.float32) / jnp.sqrt(chunks_dim)
    wc = jax.random.normal(k2, (chunks_dim, chunks_dim), jnp.float32) / jnp.sqrt(chunks_dim)
    wout = jax.random.normal(k3, (chunks_dim, 2 * chunks_dim), jnp.float32) / jnp.sqrt(2.0 * chunks_dim)
    return {'wu': wu, 'wc': wc, 'wout': wout}


if __name__ == "__main__":
    B, D, NC, E = 16, 32, 4, ENT_SIZE
    S = NC * E
    key = jax.random.PRNGKey(0)
    ks = jax.random.split(key, 8)

    source = jax.random.normal(ks[0], (B, D), jnp.float32)
    chunks = jax.random.normal(ks[1], (NC, B, D), jnp.float32)        # (chunk_len, batch, dim)
    memory_bank = jax.random.normal(ks[2], (S, B, D), jnp.float32)    # (src_len, batch, dim)
    pos_embs = jax.random.normal(ks[3], (S, B, D), jnp.float32)       # (src_len, batch, dim)
    units_mask = jax.random.bernoulli(ks[4], 0.25, (NC, B, E))
    units_mask = units_mask.at[1, 0, :].set(True)                     # fully-masked chunk -> NaN-fill path
    chunk_mask = jnp.zeros((1, B, NC), bool).at[0, 0, 3].set(True)

    params = init_params(ks[5], D, D)
    mb = (chunks, memory_bank, pos_embs, units_mask, chunk_mask)

    # f32 inputs vs exact reference
    attn_h, ret = hierarchical_attention(source, mb, params, E, kv_dtype=jnp.float32)
    jax.block_until_ready(attn_h)
    r_attn, r_av, r_ac, r_au = hierarchical_attention_reference(source, mb, params, E)
    assert jnp.allclose(attn_h, r_attn, atol=1e-2, rtol=1e-2)
    assert jnp.allclose(ret[''], r_av, atol=1e-2, rtol=1e-2)
    assert jnp.allclose(ret['_align_chunks'], r_ac, atol=1e-2, rtol=1e-2)
    assert jnp.allclose(ret['_align_units'], r_au, atol=1e-2, rtol=1e-2)

    # default bf16 memory operands (half HBM traffic for mem/pos/chunks); compare
    # against the reference fed identically-rounded inputs.
    attn_h_bf, ret_bf = hierarchical_attention(source, mb, params, E)
    jax.block_until_ready(attn_h_bf)
    mb_bf = tuple(x.astype(jnp.bfloat16).astype(jnp.float32) if x.dtype == jnp.float32 else x
                  for x in mb)
    rb_attn, rb_av, rb_ac, rb_au = hierarchical_attention_reference(source, mb_bf, params, E)
    assert jnp.allclose(attn_h_bf, rb_attn, atol=1e-2, rtol=1e-2)
    assert jnp.allclose(ret_bf[''], rb_av, atol=1e-2, rtol=1e-2)

    print("KERNEL_OK")
</pallas_src>

<mosaic_0001>
module attributes {stable_mosaic.version = 11 : i64} {
  func.func @_hier_attn_kernel(%arg0: i32, %arg1: memref<16x32xf32, #tpu.memory_space<vmem>>, %arg2: memref<4x16x32xf32, #tpu.memory_space<vmem>>, %arg3: memref<32x16x32xf32, #tpu.memory_space<vmem>>, %arg4: memref<32x16x32xf32, #tpu.memory_space<vmem>>, %arg5: memref<32x16xi32, #tpu.memory_space<vmem>>, %arg6: memref<4x16xi32, #tpu.memory_space<vmem>>, %arg7: memref<32x32xf32, #tpu.memory_space<vmem>>, %arg8: memref<32x32xf32, #tpu.memory_space<vmem>>, %arg9: memref<32x32xf32, #tpu.memory_space<vmem>>, %arg10: memref<32x32xf32, #tpu.memory_space<vmem>>, %arg11: memref<16x32xf32, #tpu.memory_space<vmem>>, %arg12: memref<32x16xf32, #tpu.memory_space<vmem>>, %arg13: memref<4x16xf32, #tpu.memory_space<vmem>>, %arg14: memref<32x16xf32, #tpu.memory_space<vmem>>) attributes {dimension_semantics = [#tpu.dimension_semantics<parallel>], iteration_bounds = array<i64: 1>, scalar_prefetch = 0 : i64, scratch_operands = 0 : i64, tpu.core_type = #tpu.core_type<tc>, window_params = [{transform_indices = @transform_0, window_bounds = array<i64: 16, 32>}, {transform_indices = @transform_1, window_bounds = array<i64: 4, 16, 32>}, {transform_indices = @transform_2, window_bounds = array<i64: 32, 16, 32>}, {transform_indices = @transform_3, window_bounds = array<i64: 32, 16, 32>}, {transform_indices = @transform_4, window_bounds = array<i64: 32, 16>}, {transform_indices = @transform_5, window_bounds = array<i64: 4, 16>}, {pipeline_mode = #tpu.pipeline_mode<synchronous>, transform_indices = @transform_6, window_bounds = array<i64: 32, 32>}, {pipeline_mode = #tpu.pipeline_mode<synchronous>, transform_indices = @transform_7, window_bounds = array<i64: 32, 32>}, {pipeline_mode = #tpu.pipeline_mode<synchronous>, transform_indices = @transform_8, window_bounds = array<i64: 32, 32>}, {pipeline_mode = #tpu.pipeline_mode<synchronous>, transform_indices = @transform_9, window_bounds = array<i64: 32, 32>}, {transform_indices = @transform_10, window_bounds = array<i64: 16, 32>}, {transform_indices = @transform_11, window_bounds = array<i64: 32, 16>}, {transform_indices = @transform_12, window_bounds = array<i64: 4, 16>}, {transform_indices = @transform_13, window_bounds = array<i64: 32, 16>}]} {
    %c0 = arith.constant 0 : index
    %c0_0 = arith.constant 0 : index
    %0 = vector.load %arg1[%c0, %c0_0] : memref<16x32xf32, #tpu.memory_space<vmem>>, vector<16x32xf32>
    %c0_1 = arith.constant 0 : index
    %c0_2 = arith.constant 0 : index
    %1 = vector.load %arg7[%c0_1, %c0_2] : memref<32x32xf32, #tpu.memory_space<vmem>>, vector<32x32xf32>
    %cst = arith.constant dense<0.000000e+00> : vector<16x32xf32>
    %2 = tpu.matmul %0, %1, %cst {dimension_numbers = #tpu.dot_dimension_numbers<[1], [0], [0], [1], [0, 0, 1, 1], [], []>} : vector<16x32xf32>, vector<32x32xf32>, vector<16x32xf32> -> vector<16x32xf32>
    %c0_3 = arith.constant 0 : index
    %c0_4 = arith.constant 0 : index
    %3 = vector.load %arg8[%c0_3, %c0_4] : memref<32x32xf32, #tpu.memory_space<vmem>>, vector<32x32xf32>
    %cst_5 = arith.constant dense<0.000000e+00> : vector<16x32xf32>
    %4 = tpu.matmul %0, %3, %cst_5 {dimension_numbers = #tpu.dot_dimension_numbers<[1], [0], [0], [1], [0, 0, 1, 1], [], []>} : vector<16x32xf32>, vector<32x32xf32>, vector<16x32xf32> -> vector<16x32xf32>
    %c0_6 = arith.constant 0 : index
    %c0_7 = arith.constant 0 : index
    %5 = vector.load %arg10[%c0_6, %c0_7] : memref<32x32xf32, #tpu.memory_space<vmem>>, vector<32x32xf32>
    %cst_8 = arith.constant dense<0.000000e+00> : vector<16x32xf32>
    %6 = tpu.matmul %0, %5, %cst_8 {dimension_numbers = #tpu.dot_dimension_numbers<[1], [0], [0], [1], [0, 0, 1, 1], [], []>} : vector<16x32xf32>, vector<32x32xf32>, vector<16x32xf32> -> vector<16x32xf32>
    %c0_9 = arith.constant 0 : index
    %c0_10 = arith.constant 0 : index
    %c0_11 = arith.constant 0 : index
    %7 = vector.load %arg4[%c0_9, %c0_10, %c0_11] : memref<32x16x32xf32, #tpu.memory_space<vmem>>, vector<32x16x32xf32>
    %8 = vector.shape_cast %2 : vector<16x32xf32> to vector<1x16x32xf32>
    %9 = vector.broadcast %8 : vector<1x16x32xf32> to vector<32x16x32xf32>
    %10 = arith.mulf %7, %9 : vector<32x16x32xf32>
    %cst_12 = arith.constant dense<0.000000e+00> : vector<32x16xf32>
    %11 = vector.multi_reduction <add>, %10, %cst_12 [2] : vector<32x16x32xf32> to vector<32x16xf32>
    %c0_13 = arith.constant 0 : index
    %c0_14 = arith.constant 0 : index
    %c0_15 = arith.constant 0 : index
    %12 = vector.load %arg2[%c0_13, %c0_14, %c0_15] : memref<4x16x32xf32, #tpu.memory_space<vmem>>, vector<4x16x32xf32>
    %13 = vector.shape_cast %4 : vector<16x32xf32> to vector<1x16x32xf32>
    %14 = vector.broadcast %13 : vector<1x16x32xf32> to vector<4x16x32xf32>
    %15 = arith.mulf %12, %14 : vector<4x16x32xf32>
    %cst_16 = arith.constant dense<0.000000e+00> : vector<4x16xf32>
    %16 = vector.multi_reduction <add>, %15, %cst_16 [2] : vector<4x16x32xf32> to vector<4x16xf32>
    %17 = vector.shape_cast %11 : vector<32x16xf32> to vector<4x8x16xf32>
    %c0_17 = arith.constant 0 : index
    %c0_18 = arith.constant 0 : index
    %18 = vector.load %arg5[%c0_17, %c0_18] : memref<32x16xi32, #tpu.memory_space<vmem>>, vector<32x16xi32>
    %19 = vector.shape_cast %18 : vector<32x16xi32> to vector<4x8x16xi32>
    %c0_i32 = arith.constant 0 : i32
    %20 = vector.broadcast %c0_i32 : i32 to vector<4x8x16xi32>
    %21 = arith.cmpi eq, %19, %20 : vector<4x8x16xi32>
    %c0_19 = arith.constant 0 : index
    %c0_20 = arith.constant 0 : index
    %22 = vector.load %arg6[%c0_19, %c0_20] : memref<4x16xi32, #tpu.memory_space<vmem>>, vector<4x16xi32>
    %c0_i32_21 = arith.constant 0 : i32
    %23 = vector.broadcast %c0_i32_21 : i32 to vector<4x16xi32>
    %24 = arith.cmpi eq, %22, %23 : vector<4x16xi32>
    %cst_22 = arith.constant -1.000000e+30 : f32
    %25 = vector.broadcast %cst_22 : f32 to vector<4x8x16xf32>
    %26 = arith.select %21, %17, %25 : vector<4x8x16xi1>, vector<4x8x16xf32>
    %cst_23 = arith.constant dense<0xFF800000> : vector<4x16xf32>
    %27 = vector.multi_reduction <maximumf>, %26, %cst_23 [1] : vector<4x8x16xf32> to vector<4x16xf32>
    %28 = vector.shape_cast %27 : vector<4x16xf32> to vector<4x1x16xf32>
    %29 = vector.broadcast %28 : vector<4x1x16xf32> to vector<4x8x16xf32>
    %30 = arith.subf %26, %29 : vector<4x8x16xf32>
    %31 = math.exp %30 : vector<4x8x16xf32>
    %cst_24 = arith.constant 0.000000e+00 : f32
    %32 = vector.broadcast %cst_24 : f32 to vector<4x8x16xf32>
    %33 = arith.select %21, %31, %32 : vector<4x8x16xi1>, vector<4x8x16xf32>
    %cst_25 = arith.constant dense<0.000000e+00> : vector<4x16xf32>
    %34 = vector.multi_reduction <add>, %33, %cst_25 [1] : vector<4x8x16xf32> to vector<4x16xf32>
    %35 = vector.shape_cast %34 : vector<4x16xf32> to vector<4x1x16xf32>
    %cst_26 = arith.constant 0.000000e+00 : f32
    %36 = vector.broadcast %cst_26 : f32 to vector<4x1x16xf32>
    %37 = arith.cmpf ogt, %35, %36 : vector<4x1x16xf32>
    %cst_27 = arith.constant 1.000000e+00 : f32
    %38 = vector.broadcast %cst_27 : f32 to vector<4x1x16xf32>
    %39 = arith.select %37, %35, %38 : vector<4x1x16xi1>, vector<4x1x16xf32>
    %40 = tpu.reciprocal %39 {approx = true} : vector<4x1x16xf32> -> vector<4x1x16xf32>
    %41 = vector.broadcast %40 : vector<4x1x16xf32> to vector<4x8x16xf32>
    %42 = arith.mulf %33, %41 : vector<4x8x16xf32>
    %cst_28 = arith.constant -1.000000e+30 : f32
    %43 = vector.broadcast %cst_28 : f32 to vector<4x16xf32>
    %44 = arith.select %24, %16, %43 : vector<4x16xi1>, vector<4x16xf32>
    %cst_29 = arith.constant dense<0xFF800000> : vector<16xf32>
    %45 = vector.multi_reduction <maximumf>, %44, %cst_29 [0] : vector<4x16xf32> to vector<16xf32>
    %46 = vector.shape_cast %45 : vector<16xf32> to vector<1x16xf32>
    %47 = vector.broadcast %46 : vector<1x16xf32> to vector<4x16xf32>
    %48 = arith.subf %44, %47 : vector<4x16xf32>
    %49 = math.exp %48 : vector<4x16xf32>
    %cst_30 = arith.constant 0.000000e+00 : f32
    %50 = vector.broadcast %cst_30 : f32 to vector<4x16xf32>
    %51 = arith.select %24, %49, %50 : vector<4x16xi1>, vector<4x16xf32>
    %cst_31 = arith.constant dense<0.000000e+00> : vector<16xf32>
    %52 = vector.multi_reduction <add>, %51, %cst_31 [0] : vector<4x16xf32> to vector<16xf32>
    %53 = vector.shape_cast %52 : vector<16xf32> to vector<1x16xf32>
    %cst_32 = arith.constant 0.000000e+00 : f32
    %54 = vector.broadcast %cst_32 : f32 to vector<1x16xf32>
    %55 = arith.cmpf ogt, %53, %54 : vector<1x16xf32>
    %cst_33 = arith.constant 1.000000e+00 : f32
    %56 = vector.broadcast %cst_33 : f32 to vector<1x16xf32>
    %57 = arith.select %55, %53, %56 : vector<1x16xi1>, vector<1x16xf32>
    %58 = tpu.reciprocal %57 {approx = true} : vector<1x16xf32> -> vector<1x16xf32>
    %59 = vector.broadcast %58 : vector<1x16xf32> to vector<4x16xf32>
    %60 = arith.mulf %51, %59 : vector<4x16xf32>
    %61 = vector.shape_cast %60 : vector<4x16xf32> to vector<4x1x16xf32>
    %62 = vector.broadcast %61 : vector<4x1x16xf32> to vector<4x8x16xf32>
    %63 = arith.mulf %62, %42 : vector<4x8x16xf32>
    %64 = vector.shape_cast %63 : vector<4x8x16xf32> to vector<32x16xf32>
    %65 = vector.shape_cast %64 : vector<32x16xf32> to vector<32x16x1xf32>
    %c0_34 = arith.constant 0 : index
    %c0_35 = arith.constant 0 : index
    %c0_36 = arith.constant 0 : index
    %66 = vector.load %arg3[%c0_34, %c0_35, %c0_36] : memref<32x16x32xf32, #tpu.memory_space<vmem>>, vector<32x16x32xf32>
    %67 = vector.broadcast %65 : vector<32x16x1xf32> to vector<32x16x32xf32>
    %68 = arith.mulf %67, %66 : vector<32x16x32xf32>
    %cst_37 = arith.constant dense<0.000000e+00> : vector<16x32xf32>
    %69 = vector.multi_reduction <add>, %68, %cst_37 [0] : vector<32x16x32xf32> to vector<16x32xf32>
    %c0_38 = arith.constant 0 : index
    %c0_39 = arith.constant 0 : index
    %70 = vector.load %arg9[%c0_38, %c0_39] : memref<32x32xf32, #tpu.memory_space<vmem>>, vector<32x32xf32>
    %cst_40 = arith.constant dense<0.000000e+00> : vector<16x32xf32>
    %71 = tpu.matmul %69, %70, %cst_40 {dimension_numbers = #tpu.dot_dimension_numbers<[1], [0], [0], [1], [0, 0, 1, 1], [], []>} : vector<16x32xf32>, vector<32x32xf32>, vector<16x32xf32> -> vector<16x32xf32>
    %72 = arith.addf %71, %6 : vector<16x32xf32>
    %73 = math.tanh %72 : vector<16x32xf32>
    %c0_41 = arith.constant 0 : index
    %c0_42 = arith.constant 0 : index
    %74 = vector.load %arg11[%c0_41, %c0_42] : memref<16x32xf32, #tpu.memory_space<vmem>>, vector<16x32xf32>
    tpu.vector_store %arg11[%c0_41, %c0_42], %73 {strides = array<i32>} : memref<16x32xf32, #tpu.memory_space<vmem>>, vector<16x32xf32>,
    %c0_43 = arith.constant 0 : index
    %c0_44 = arith.constant 0 : index
    %75 = vector.load %arg12[%c0_43, %c0_44] : memref<32x16xf32, #tpu.memory_space<vmem>>, vector<32x16xf32>
    tpu.vector_store %arg12[%c0_43, %c0_44], %64 {strides = array<i32>} : memref<32x16xf32, #tpu.memory_space<vmem>>, vector<32x16xf32>,
    %c0_45 = arith.constant 0 : index
    %c0_46 = arith.constant 0 : index
    %76 = vector.load %arg13[%c0_45, %c0_46] : memref<4x16xf32, #tpu.memory_space<vmem>>, vector<4x16xf32>
    tpu.vector_store %arg13[%c0_45, %c0_46], %60 {strides = array<i32>} : memref<4x16xf32, #tpu.memory_space<vmem>>, vector<4x16xf32>,
    %77 = vector.shape_cast %42 : vector<4x8x16xf32> to vector<32x16xf32>
    %c0_47 = arith.constant 0 : index
    %c0_48 = arith.constant 0 : index
    %78 = vector.load %arg14[%c0_47, %c0_48] : memref<32x16xf32, #tpu.memory_space<vmem>>, vector<32x16xf32>
    tpu.vector_store %arg14[%c0_47, %c0_48], %77 {strides = array<i32>} : memref<32x16xf32, #tpu.memory_space<vmem>>, vector<32x16xf32>,
    return
  }
  func.func @transform_0(%arg0: i32) -> (i32, i32) {
    %c0_i32 = arith.constant 0 : i32
    %c0_i32_0 = arith.constant 0 : i32
    return %arg0, %c0_i32 : i32, i32
  }
  func.func @transform_1(%arg0: i32) -> (i32, i32, i32) {
    %c0_i32 = arith.constant 0 : i32
    %c0_i32_0 = arith.constant 0 : i32
    %c0_i32_1 = arith.constant 0 : i32
    return %c0_i32, %arg0, %c0_i32_0 : i32, i32, i32
  }
  func.func @transform_2(%arg0: i32) -> (i32, i32, i32) {
    %c0_i32 = arith.constant 0 : i32
    %c0_i32_0 = arith.constant 0 : i32
    %c0_i32_1 = arith.constant 0 : i32
    return %c0_i32, %arg0, %c0_i32_0 : i32, i32, i32
  }
  func.func @transform_3(%arg0: i32) -> (i32, i32, i32) {
    %c0_i32 = arith.constant 0 : i32
    %c0_i32_0 = arith.constant 0 : i32
    %c0_i32_1 = arith.constant 0 : i32
    return %c0_i32, %arg0, %c0_i32_0 : i32, i32, i32
  }
  func.func @transform_4(%arg0: i32) -> (i32, i32) {
    %c0_i32 = arith.constant 0 : i32
    %c0_i32_0 = arith.constant 0 : i32
    return %c0_i32, %arg0 : i32, i32
  }
  func.func @transform_5(%arg0: i32) -> (i32, i32) {
    %c0_i32 = arith.constant 0 : i32
    %c0_i32_0 = arith.constant 0 : i32
    return %c0_i32, %arg0 : i32, i32
  }
  func.func @transform_6(%arg0: i32) -> (i32, i32) {
    %c0_i32 = arith.constant 0 : i32
    %c0_i32_0 = arith.constant 0 : i32
    %c0_i32_1 = arith.constant 0 : i32
    return %c0_i32, %c0_i32_0 : i32, i32
  }
  func.func @transform_7(%arg0: i32) -> (i32, i32) {
    %c0_i32 = arith.constant 0 : i32
    %c0_i32_0 = arith.constant 0 : i32
    %c0_i32_1 = arith.constant 0 : i32
    return %c0_i32, %c0_i32_0 : i32, i32
  }
  func.func @transform_8(%arg0: i32) -> (i32, i32) {
    %c0_i32 = arith.constant 0 : i32
    %c0_i32_0 = arith.constant 0 : i32
    %c0_i32_1 = arith.constant 0 : i32
    return %c0_i32, %c0_i32_0 : i32, i32
  }
  func.func @transform_9(%arg0: i32) -> (i32, i32) {
    %c0_i32 = arith.constant 0 : i32
    %c0_i32_0 = arith.constant 0 : i32
    %c0_i32_1 = arith.constant 0 : i32
    return %c0_i32, %c0_i32_0 : i32, i32
  }
  func.func @transform_10(%arg0: i32) -> (i32, i32) {
    %c0_i32 = arith.constant 0 : i32
    %c0_i32_0 = arith.constant 0 : i32
    return %arg0, %c0_i32 : i32, i32
  }
  func.func @transform_11(%arg0: i32) -> (i32, i32) {
    %c0_i32 = arith.constant 0 : i32
    %c0_i32_0 = arith.constant 0 : i32
    return %c0_i32, %arg0 : i32, i32
  }
  func.func @transform_12(%arg0: i32) -> (i32, i32) {
    %c0_i32 = arith.constant 0 : i32
    %c0_i32_0 = arith.constant 0 : i32
    return %c0_i32, %arg0 : i32, i32
  }
  func.func @transform_13(%arg0: i32) -> (i32, i32) {
    %c0_i32 = arith.constant 0 : i32
    %c0_i32_0 = arith.constant 0 : i32
    return %c0_i32, %arg0 : i32, i32
  }
}

</mosaic_0001>

<bundles_post_ra>
// kernel: tpu_custom_call.1
= control target key start
LH: loop header
LB: loop body
LE: loop exit
PB: predicated region body
PF: predicated region fallthrough
CT: control target
= control target key end

     0   :  { %19 = vsyncpa [#allocation3], 0  ;;  %s3409_s0 = inlined_call_operand.hbm [shape: f32[16,32], index: 0, kind: input, shape index: {}]   ;;  %s3410_s1 = inlined_call_operand.hbm [shape: f32[4,16,32], index: 1, kind: input, shape index: {}]   ;;  %s3411_s2 = inlined_call_operand.hbm [shape: f32[32,16,32], index: 2, kind: input, shape index: {}]   ;;  %s3412_s3 = inlined_call_operand.hbm [shape: f32[32,16,32], index: 3, kind: input, shape index: {}]   ;;  %s3413_s4 = inlined_call_operand.vmem [shape: s32[32,16], index: 4, kind: input, shape index: {}]   ;;  %s3414_s5 = inlined_call_operand.hbm [shape: s32[4,16], index: 5, kind: input, shape index: {}]   ;;  %s3415_s6 = inlined_call_operand.vmem [shape: f32[32,32], index: 6, kind: input, shape index: {}]   ;;  %s3416_s7 = inlined_call_operand.vmem [shape: f32[32,32], index: 7, kind: input, shape index: {}]   ;;  %s3417_s8 = inlined_call_operand.hbm [shape: f32[32,32], index: 8, kind: input, shape index: {}]   ;;  %s3418_s9 = inlined_call_operand.hbm [shape: f32[32,32], index: 9, kind: input, shape index: {}]   ;;  %s3419_s10 = inlined_call_operand.hbm [shape: f32[16,32], index: 10, kind: output, shape index: {0}]   ;;  %s3420_s11 = inlined_call_operand.vmem [shape: f32[32,16], index: 11, kind: output, shape index: {1}]   ;;  %s3421_s12 = inlined_call_operand.hbm [shape: f32[4,16], index: 12, kind: output, shape index: {2}]   ;;  %s3422_s13 = inlined_call_operand.vmem [shape: f32[32,16], index: 13, kind: output, shape index: {3}]  }
   0x1   :  { %20 = vsyncpa [#allocation6], 0 }
   0x2   :  { %21 = vsyncpa [#allocation9], 0 }
   0x3   :  { %22 = vsyncpa [#allocation12], 0 }
   0x4   :  { %23 = vsyncpa [#allocation4], 0 }
   0x5   :  { %24 = vsyncpa [#allocation16], 0  ;;  %s2462_s25 = smov [#allocation5]   ;;  %s2463_s27 = smov [#allocation8]  }
   0x6   :  { %s42_s26 = sshll.u32 %s2462_s25, 4  ;;  %s66_s28 = sshll.u32 %s2463_s27, 4  ;;  %s43_s26 = int_to_ptr.vmem [resolvable:$true] %s42_s26  ;;  %s2544_s28 = int_to_ptr.vmem [resolvable:$true] %s66_s28 }
   0x7   :  { %s2252_s14 = scalar_lea.hbm %s3410_s1, 1024 }
   0x8   :  { %p2253_p0 = scmp.ne.s32.totalorder %s3410_s1, %s2252_s14  ;;  %p2256_p1 = scmp.lt.u32.totalorder %s2252_s14, %s3410_s1 }
   0xa   :  { %p2258_p2 = pnand %p2256_p1, %p2253_p0 }
   0xc   :  { %2261 = shalt.err (!%p2258_p2)
}
   0xd   :  { %s2262_s19 = scalar_lea.vmem %s43_s26, 1024  ;;  %p2267_p4 = scmp.lt.s32.totalorder %s43_s26, %s43_s26 }
   0xe   :  { %p2263_p3 = scmp.ne.s32.totalorder %s43_s26, %s2262_s19  ;;  %p2268_p5 = scmp.lt.s32.totalorder %s2262_s19, %s2262_s19 }
  0x10   :  { %p2269_p6 = por %p2268_p5, %p2267_p4 }
  0x12   :  { %p2270_p7 = pnand %p2269_p6, %p2263_p3 }
  0x14   :  { %2273 = shalt.err (!%p2270_p7)
}
  0x15   :  { %s2464_s20 = smov 128   ;;  %s2465_s21 = smov 8  }
  0x16   :  { %48 = dma.hbm_to_vmem [thread:$0]  %s3410_s1, 1024, %s43_s26, [#allocation6], %s2464_s20, %s2464_s20, %s2465_s21  }
  0x17   :  { %s2274_s27 = scalar_lea.hbm %s3412_s3, 8192 }
  0x18   :  { %p2275_p8 = scmp.ne.s32.totalorder %s3412_s3, %s2274_s27  ;;  %p2278_p9 = scmp.lt.u32.totalorder %s2274_s27, %s3412_s3 }
  0x1a   :  { %p2280_p10 = pnand %p2278_p9, %p2275_p8 }
  0x1c   :  { %2283 = shalt.err (!%p2280_p10)
}
  0x1d   :  { %s2284_s16 = scalar_lea.vmem %s2544_s28, 8192  ;;  %p2289_p12 = scmp.lt.s32.totalorder %s2544_s28, %s2544_s28 }
  0x1e   :  { %p2285_p11 = scmp.ne.s32.totalorder %s2544_s28, %s2284_s16  ;;  %p2290_p13 = scmp.lt.s32.totalorder %s2284_s16, %s2284_s16 }
  0x20   :  { %p2291_p0 = por %p2290_p13, %p2289_p12 }
  0x22   :  { %p2292_p1 = pnand %p2291_p0, %p2285_p11 }
  0x24   :  { %2295 = shalt.err (!%p2292_p1)
}
  0x25   :  { %72 = dma.hbm_to_vmem [thread:$0]  %s3412_s3, 8192, %s2544_s28, [#allocation9], %s2464_s20, %s2464_s20, %s2465_s21  }
  0x26   :  { %s2466_s17 = smov [#allocation11]   ;;  %s2467_s19 = smov [#allocation2]  }
  0x27   :  { %s94_s18 = sshll.u32 %s2466_s17, 4  ;;  %s30_s22 = sshll.u32 %s2467_s19, 4  ;;  %s95_s18 = int_to_ptr.vmem [resolvable:$true] %s94_s18  ;;  %s2581_s22 = int_to_ptr.vmem [resolvable:$true] %s30_s22 }
  0x28   :  { %s2296_s25 = scalar_lea.hbm %s3417_s8, 512 }
  0x29   :  { %p2297_p2 = scmp.ne.s32.totalorder %s3417_s8, %s2296_s25  ;;  %p2300_p3 = scmp.lt.u32.totalorder %s2296_s25, %s3417_s8 }
  0x2b   :  { %p2302_p4 = pnand %p2300_p3, %p2297_p2 }
  0x2d   :  { %2305 = shalt.err (!%p2302_p4)
}
  0x2e   :  { %s2306_s3 = scalar_lea.vmem %s95_s18, 512  ;;  %p2311_p6 = scmp.lt.s32.totalorder %s95_s18, %s95_s18 }
  0x2f   :  { %p2307_p5 = scmp.ne.s32.totalorder %s95_s18, %s2306_s3  ;;  %p2312_p7 = scmp.lt.s32.totalorder %s2306_s3, %s2306_s3 }
  0x31   :  { %p2313_p8 = por %p2312_p7, %p2311_p6 }
  0x33   :  { %p2314_p9 = pnand %p2313_p8, %p2307_p5 }
  0x35   :  { %2317 = shalt.err (!%p2314_p9)
}
  0x36   :  { %100 = dma.hbm_to_vmem [thread:$0]  %s3417_s8, 512, %s95_s18, [#allocation12], %s2464_s20, %s2464_s20, %s2465_s21  }
  0x37   :  { %s2318_s26 = scalar_lea.hbm %s3409_s0, 256 }
  0x38   :  { %p2319_p10 = scmp.ne.s32.totalorder %s3409_s0, %s2318_s26  ;;  %p2322_p11 = scmp.lt.u32.totalorder %s2318_s26, %s3409_s0 }
  0x3a   :  { %p2324_p12 = pnand %p2322_p11, %p2319_p10 }
  0x3c   :  { %2327 = shalt.err (!%p2324_p12)
}
  0x3d   :  { %s2328_s25 = scalar_lea.vmem %s2581_s22, 256  ;;  %p2333_p0 = scmp.lt.s32.totalorder %s2581_s22, %s2581_s22 }
  0x3e   :  { %p2329_p13 = scmp.ne.s32.totalorder %s2581_s22, %s2328_s25  ;;  %p2334_p1 = scmp.lt.s32.totalorder %s2328_s25, %s2328_s25 }
  0x40   :  { %p2335_p2 = por %p2334_p1, %p2333_p0 }
  0x42   :  { %p2336_p3 = pnand %p2335_p2, %p2329_p13 }
  0x44   :  { %2339 = shalt.err (!%p2336_p3)
}
  0x45   :  { %36 = dma.hbm_to_vmem [thread:$0]  %s3409_s0, 256, %s2581_s22, [#allocation3], %s2464_s20, %s2464_s20, %s2465_s21  }
  0x46   :  { %s2468_s27 = smov [#allocation7]   ;;  %s2469_s30 = smov [#allocation10]  }
  0x47   :  { %s54_s29 = sshll.u32 %s2468_s27, 4  ;;  %s81_s14 = sshll.u32 %s2469_s30, 4  ;;  %s55_s29 = int_to_ptr.vmem [resolvable:$true] %s54_s29  ;;  %s82_s14 = int_to_ptr.vmem [resolvable:$true] %s81_s14 }
  0x48   :  { %s2340_s15 = scalar_lea.hbm %s3411_s2, 8192 }
  0x49   :  { %p2341_p4 = scmp.ne.s32.totalorder %s3411_s2, %s2340_s15  ;;  %p2344_p5 = scmp.lt.u32.totalorder %s2340_s15, %s3411_s2 }
  0x4b   :  { %p2346_p6 = pnand %p2344_p5, %p2341_p4 }
  0x4d   :  { %2349 = shalt.err (!%p2346_p6)
}
  0x4e   :  { %s2350_s0 = scalar_lea.vmem %s55_s29, 8192  ;;  %p2355_p8 = scmp.lt.s32.totalorder %s55_s29, %s55_s29 }
  0x4f   :  { %p2351_p7 = scmp.ne.s32.totalorder %s55_s29, %s2350_s0  ;;  %p2356_p9 = scmp.lt.s32.totalorder %s2350_s0, %s2350_s0 }
  0x51   :  { %p2357_p10 = por %p2356_p9, %p2355_p8 }
  0x53   :  { %p2358_p11 = pnand %p2357_p10, %p2351_p7 }
  0x55   :  { %2361 = shalt.err (!%p2358_p11)
}
  0x56   :  { %60 = dma.hbm_to_vmem [thread:$0]  %s3411_s2, 8192, %s55_s29, [#allocation6], %s2464_s20, %s2464_s20, %s2465_s21  }
  0x57   :  { %s2362_s25 = scalar_lea.hbm %s3414_s5, 64 }
  0x58   :  { %p2363_p12 = scmp.ne.s32.totalorder %s3414_s5, %s2362_s25  ;;  %p2366_p13 = scmp.lt.u32.totalorder %s2362_s25, %s3414_s5 }
  0x5a   :  { %p2368_p0 = pnand %p2366_p13, %p2363_p12 }
  0x5c   :  { %2371 = shalt.err (!%p2368_p0)
}
  0x5d   :  { %s2372_s3 = scalar_lea.vmem %s82_s14, 64  ;;  %p2377_p2 = scmp.lt.s32.totalorder %s82_s14, %s82_s14 }
  0x5e   :  { %p2373_p1 = scmp.ne.s32.totalorder %s82_s14, %s2372_s3  ;;  %p2378_p3 = scmp.lt.s32.totalorder %s2372_s3, %s2372_s3 }
  0x60   :  { %p2379_p4 = por %p2378_p3, %p2377_p2 }
  0x62   :  { %p2380_p5 = pnand %p2379_p4, %p2373_p1 }
  0x64   :  { %2383 = shalt.err (!%p2380_p5)
}
  0x65   :  { %84 = dma.hbm_to_vmem [thread:$0]  %s3414_s5, 64, %s82_s14, [#allocation9]  }
  0x66   :  { %s2470_s28 = smov [#allocation13]   ;;  %s2384_s26 = scalar_lea.hbm %s3418_s9, 512 }
  0x67   :  { %s106_s15 = sshll.u32 %s2470_s28, 4  ;;  %p2385_p6 = scmp.ne.s32.totalorder %s3418_s9, %s2384_s26  ;;  %s107_s15 = int_to_ptr.vmem [resolvable:$true] %s106_s15 }
  0x68   :  { %p2388_p7 = scmp.lt.u32.totalorder %s2384_s26, %s3418_s9 }
  0x6a   :  { %p2390_p8 = pnand %p2388_p7, %p2385_p6 }
  0x6c   :  { %2393 = shalt.err (!%p2390_p8)
}
  0x6d   :  { %s2394_s23 = scalar_lea.vmem %s107_s15, 512  ;;  %p2399_p10 = scmp.lt.s32.totalorder %s107_s15, %s107_s15 }
  0x6e   :  { %p2395_p9 = scmp.ne.s32.totalorder %s107_s15, %s2394_s23  ;;  %p2400_p11 = scmp.lt.s32.totalorder %s2394_s23, %s2394_s23 }
  0x70   :  { %p2401_p12 = por %p2400_p11, %p2399_p10 }
  0x72   :  { %p2402_p13 = pnand %p2401_p12, %p2395_p9 }
  0x74   :  { %2405 = shalt.err (!%p2402_p13)
}
  0x75   :  { %112 = dma.hbm_to_vmem [thread:$0]  %s3418_s9, 512, %s107_s15, [#allocation12], %s2464_s20, %s2464_s20, %s2465_s21  }
  0x76   :  { %2450 = dma.done.wait [#allocation3], 256  }
  0x77   :  { %2451 = vsyncadd [#allocation3], 4294967040 }
  0x78   :  { %2452 = dma.done.wait [#allocation6], 9216  }
  0x79   :  { %2453 = vsyncadd [#allocation6], 4294958080 }
  0x7a   :  { %2454 = dma.done.wait [#allocation9], 8256  }
  0x7b   :  { %2455 = vsyncadd [#allocation9], 4294959040 }
  0x7c   :  { %2456 = dma.done.wait [#allocation12], 1024  }
  0x7d   :  { %2457 = vsyncadd [#allocation12], 4294966272  ;;  %vm140_vm0 = vcmask 261120   ;;  %v136_v0 = vld [vmem:[%s3415_s6] sm:$0xff]  ;;  %v137_v1 = vld [vmem:[%s3415_s6 + $0x8] sm:$0xff]  ;;  %vm825_vm1 = vcmask 130112  }
  0x7e   :  { %v138_v2 = vld [vmem:[%s3415_s6 + $0x10] sm:$0xff]  ;;  %v2181_v3 = vpack.c.bf16 %v137_v1, %v136_v0  ;;  %v139_v4 = vld [vmem:[%s3415_s6 + $0x18] sm:$0xff]  ;;  %v134_v5 = vld [vmem:[#allocation2] sm:$0xff]  ;;  %vm1106_vm2 = vcmask 1041409   ;;  %vm1108_vm3 = vcmask 1042434   ;;  %vm1110_vm4 = vcmask 1043459  }
  0x7f   :  { %v2185_v6 = vpack.c.bf16 %v139_v4, %v138_v2  ;;  %2145 = vmatprep.mubr.msk.f32.mxu1 %vm140_vm0, %v134_v5  ;;  %v222_v7 = vld [vmem:[%s3416_s7] sm:$0xff]  ;;  %v223_v8 = vld [vmem:[%s3416_s7 + $0x8] sm:$0xff]  ;;  %2167 = vmatprep.mubr.msk.f32.mxu0 %vm140_vm0, %v134_v5  ;;  %v224_v10 = vld [vmem:[%s3416_s7 + $0x10] sm:$0xff]  ;;  %vm1112_vm5 = vcmask 1044484   ;;  %vm1114_vm6 = vcmask 1045509   ;;  %vm1116_vm7 = vcmask 1046534  }
  0x80   :  { %2182 = vmatprep.subr.bf16.mxu1 %v2181_v3  ;;  %v2189_v9 = vpack.c.bf16 %v223_v8, %v222_v7  ;;  %v225_v11 = vld [vmem:[%s3416_s7 + $0x18] sm:$0xff]  ;;  %v135_v12 = vld [vmem:[#allocation2 + $0x8] sm:$0xff]  ;;  %v380_v15 = vld [vmem:[#allocation8] sm:$0xff]  ;;  %vm1118_vm8 = vcmask 1047559   ;;  %vm1149_vm10 = vcmask 130048   ;;  %vm1287_vm14 = vcmask 125952  }
  0x81   :  { %2184 = vmatpush3.bf16.msra.mxu1 %v2181_v3  ;;  %v2193_v13 = vpack.c.bf16 %v225_v11, %v224_v10  ;;  %v381_v14 = vld [vmem:[#allocation8 + $0x8] sm:$0xff]  ;;  %v383_v17 = vld [vmem:[#allocation8 + $0x18] sm:$0xff]  ;;  %v382_v20 = vld [vmem:[#allocation8 + $0x10] sm:$0xff] }
  0x82   :  { %2186 = vmatprep.subr.bf16.mxu1 %v2185_v6  ;;  %v385_v26 = vld [vmem:[#allocation8 + $0x28] sm:$0xff]  ;;  %v384_v27 = vld [vmem:[#allocation8 + $0x20] sm:$0xff]  ;;  %v387_v32 = vld [vmem:[#allocation8 + $0x38] sm:$0xff] }
  0x83   :  { %v386_v34 = vld [vmem:[#allocation8 + $0x30] sm:$0xff]  ;;  %v389_v40 = vld [vmem:[#allocation8 + $0x48] sm:$0xff]  ;;  %v388_v41 = vld [vmem:[#allocation8 + $0x40] sm:$0xff] }
  0x84   :  { %v391_v46 = vld [vmem:[#allocation8 + $0x58] sm:$0xff]  ;;  %v390_v47 = vld [vmem:[#allocation8 + $0x50] sm:$0xff]  ;;  %v393_v52 = vld [vmem:[#allocation8 + $0x68] sm:$0xff] }
  0x85   :  { %2188 = vmatpush3.bf16.msra.mxu1 %v2185_v6  ;;  %v392_v53 = vld [vmem:[#allocation8 + $0x60] sm:$0xff]  ;;  %v395_v58 = vld [vmem:[#allocation8 + $0x78] sm:$0xff]  ;;  %v394_v59 = vld [vmem:[#allocation8 + $0x70] sm:$0xff] }
  0x86   :  { %2190 = vmatprep.subr.bf16.mxu1 %v2189_v9  ;;  %v397_v0 = vld [vmem:[#allocation8 + $0x88] sm:$0xff]  ;;  %v396_v1 = vld [vmem:[#allocation8 + $0x80] sm:$0xff]  ;;  %v399_v6 = vld [vmem:[#allocation8 + $0x98] sm:$0xff] }
  0x87   :  { %v398_v7 = vld [vmem:[#allocation8 + $0x90] sm:$0xff] }
  0x88   :  { %2146 = vmatmul.mubr.msk.f32.vlgmr.msra.gmra.mrb[0].mxu1 %vm140_vm0, %v135_v12 }
  0x89   :  { %2192 = vmatpush3.bf16.msra.mxu1 %v2189_v9  ;;  %2156 = vmatprep.mubr.msk.f32.mxu1 %vm140_vm0, %v134_v5 }
  0x8a   :  { %2194 = vmatprep.subr.bf16.mxu1 %v2193_v13 }
  0x8d   :  { %2196 = vmatpush3.bf16.msra.mxu1 %v2193_v13  ;;  %v400_v13 = vld [vmem:[#allocation8 + $0xa0] sm:$0xff] }
  0x90   :  { %2157 = vmatmul.mubr.msk.f32.vlgmr.msra.gmra.mrb[2].mxu1 %vm140_vm0, %v135_v12  ;;  %v401_v12 = vld [vmem:[#allocation8 + $0xa8] sm:$0xff] }
 0x15b   :  { %v2689_v16 = vpop.f32.mrb[0].mxu1 }
 0x15c   :  { %v2691_v18 = vpop.f32.mrb[1].mxu1  ;;  %v445_v19 = vmul.f32 %v2689_v16, %v381_v14  ;;  %v447_v23 = vmul.f32 %v2689_v16, %v383_v17  ;;  %v449_v29 = vmul.f32 %v2689_v16, %v385_v26  ;;  %v451_v37 = vmul.f32 %v2689_v16, %v387_v32  ;;  %v405_v26 = vld [vmem:[#allocation8 + $0xc8] sm:$0xff]  ;;  %v407_v32 = vld [vmem:[#allocation8 + $0xd8] sm:$0xff] }
 0x15d   :  { %v444_v21 = vmul.f32 %v380_v15, %v2691_v18  ;;  %v446_v25 = vmul.f32 %v382_v20, %v2691_v18  ;;  %v448_v31 = vmul.f32 %v384_v27, %v2691_v18  ;;  %v450_v39 = vmul.f32 %v386_v34, %v2691_v18  ;;  %v403_v20 = vld [vmem:[#allocation8 + $0xb8] sm:$0xff]  ;;  %v404_v27 = vld [vmem:[#allocation8 + $0xc0] sm:$0xff]  ;;  %v406_v34 = vld [vmem:[#allocation8 + $0xd0] sm:$0xff] }
 0x15e   :  { %v511_v22 = vsel %vm140_vm0, %v445_v19, 0.0  ;;  %v517_v28 = vsel %vm140_vm0, %v447_v23, 0.0  ;;  %v523_v36 = vsel %vm140_vm0, %v449_v29, 0.0  ;;  %v529_v42 = vsel %vm140_vm0, %v451_v37, 0.0 }
 0x15f   :  { %512 = vadd.xlane.f32.xlu1 %v511_v22  ;;  %v508_v24 = vsel %vm140_vm0, %v444_v21, 0.0  ;;  %v514_v30 = vsel %vm140_vm0, %v446_v25, 0.0  ;;  %v520_v38 = vsel %vm140_vm0, %v448_v31, 0.0  ;;  %v453_v43 = vmul.f32 %v2689_v16, %v389_v40  ;;  %v402_v21 = vld [vmem:[#allocation8 + $0xb0] sm:$0xff]  ;;  %v409_v40 = vld [vmem:[#allocation8 + $0xe8] sm:$0xff] }
 0x160   :  { %509 = vadd.xlane.f32.xlu0 %v508_v24  ;;  %v526_v44 = vsel %vm140_vm0, %v450_v39, 0.0  ;;  %v452_v45 = vmul.f32 %v388_v41, %v2691_v18  ;;  %v455_v49 = vmul.f32 %v2689_v16, %v391_v46  ;;  %v454_v51 = vmul.f32 %v390_v47, %v2691_v18  ;;  %v408_v41 = vld [vmem:[#allocation8 + $0xe0] sm:$0xff]  ;;  %v411_v46 = vld [vmem:[#allocation8 + $0xf8] sm:$0xff]  ;;  %v410_v47 = vld [vmem:[#allocation8 + $0xf0] sm:$0xff] }
 0x161   :  { %v535_v48 = vsel %vm140_vm0, %v453_v43, 0.0  ;;  %v457_v55 = vmul.f32 %v2689_v16, %v393_v52  ;;  %v456_v57 = vmul.f32 %v392_v53, %v2691_v18  ;;  %v459_v61 = vmul.f32 %v2689_v16, %v395_v58  ;;  %v413_v52 = vld [vmem:[#allocation8 + $0x108] sm:$0xff]  ;;  %v412_v53 = vld [vmem:[#allocation8 + $0x100] sm:$0xff]  ;;  %v415_v58 = vld [vmem:[#allocation8 + $0x118] sm:$0xff] }
 0x162   :  { %v532_v50 = vsel %vm140_vm0, %v452_v45, 0.0  ;;  %v541_v54 = vsel %vm140_vm0, %v455_v49, 0.0  ;;  %v538_v56 = vsel %vm140_vm0, %v454_v51, 0.0  ;;  %v458_v63 = vmul.f32 %v394_v59, %v2691_v18  ;;  %v414_v59 = vld [vmem:[#allocation8 + $0x110] sm:$0xff] }
 0x163   :  { %518 = vadd.xlane.f32.xlu1 %v517_v28  ;;  %v2703_v33 = vpop.f32.mrb[2].mxu1  ;;  %v547_v60 = vsel %vm140_vm0, %v457_v55, 0.0  ;;  %v544_v62 = vsel %vm140_vm0, %v456_v57, 0.0  ;;  %v553_v2 = vsel %vm140_vm0, %v459_v61, 0.0  ;;  %v461_v3 = vmul.f32 %v2689_v16, %v397_v0  ;;  %v417_v0 = vld [vmem:[#allocation8 + $0x128] sm:$0xff] }
 0x164   :  { %515 = vadd.xlane.f32.xlu0 %v514_v30  ;;  %v2705_v35 = vpop.f32.mrb[3].mxu1  ;;  %v550_v4 = vsel %vm140_vm0, %v458_v63, 0.0  ;;  %v460_v5 = vmul.f32 %v396_v1, %v2691_v18  ;;  %v463_v9 = vmul.f32 %v2689_v16, %v399_v6  ;;  %v462_v11 = vmul.f32 %v398_v7, %v2691_v18  ;;  %v416_v1 = vld [vmem:[#allocation8 + $0x120] sm:$0xff] }
 0x165   :  { %v559_v8 = vsel %vm140_vm0, %v461_v3, 0.0  ;;  %v465_v15 = vmul.f32 %v2689_v16, %v401_v12  ;;  %v464_v19 = vmul.f32 %v400_v13, %v2691_v18  ;;  %v467_v23 = vmul.f32 %v2689_v16, %v403_v20  ;;  %v705_v12 = vld [vmem:[#allocation5 + $0x28] sm:$0xff]  ;;  %v707_v20 = vld [vmem:[#allocation5 + $0x38] sm:$0xff] }
 0x166   :  { %v556_v10 = vsel %vm140_vm0, %v460_v5, 0.0  ;;  %v565_v14 = vsel %vm140_vm0, %v463_v9, 0.0  ;;  %v562_v17 = vsel %vm140_vm0, %v462_v11, 0.0  ;;  %v466_v25 = vmul.f32 %v402_v21, %v2691_v18  ;;  %v701_v5 = vld [vmem:[#allocation5 + $0x8] sm:$0xff]  ;;  %v704_v21 = vld [vmem:[#allocation5 + $0x20] sm:$0xff] }
 0x167   :  { %524 = vadd.xlane.f32.xlu1 %v523_v36  ;;  %v571_v22 = vsel %vm140_vm0, %v465_v15, 0.0  ;;  %v568_v24 = vsel %vm140_vm0, %v464_v19, 0.0  ;;  %v577_v28 = vsel %vm140_vm0, %v467_v23, 0.0  ;;  %v469_v29 = vmul.f32 %v2689_v16, %v405_v26  ;;  %v702_v26 = vld [vmem:[#allocation5 + $0x10] sm:$0xff] }
 0x168   :  { %521 = vadd.xlane.f32.xlu0 %v520_v38  ;;  %v574_v30 = vsel %vm140_vm0, %v466_v25, 0.0  ;;  %v468_v31 = vmul.f32 %v404_v27, %v2691_v18  ;;  %v471_v37 = vmul.f32 %v2689_v16, %v407_v32  ;;  %v470_v39 = vmul.f32 %v406_v34, %v2691_v18  ;;  %v706_v27 = vld [vmem:[#allocation5 + $0x30] sm:$0xff]  ;;  %v419_v32 = vld [vmem:[#allocation8 + $0x138] sm:$0xff] }
 0x169   :  { %v583_v36 = vsel %vm140_vm0, %v469_v29, 0.0  ;;  %v473_v43 = vmul.f32 %v2689_v16, %v409_v40  ;;  %v472_v45 = vmul.f32 %v408_v41, %v2691_v18  ;;  %v475_v49 = vmul.f32 %v2689_v16, %v411_v46  ;;  %v420_v40 = vld [vmem:[#allocation8 + $0x140] sm:$0xff] }
 0x16a   :  { %v580_v38 = vsel %vm140_vm0, %v468_v31, 0.0  ;;  %v474_v51 = vmul.f32 %v410_v47, %v2691_v18  ;;  %v477_v55 = vmul.f32 %v2689_v16, %v413_v52  ;;  %v476_v57 = vmul.f32 %v412_v53, %v2691_v18 }
 0x16b   :  { %530 = vadd.xlane.f32.xlu1 %v529_v42  ;;  %v589_v42 = vsel %vm140_vm0, %v471_v37, 0.0  ;;  %v479_v61 = vmul.f32 %v2689_v16, %v415_v58  ;;  %v478_v63 = vmul.f32 %v414_v59, %v2691_v18  ;;  %v480_v7 = vmul.f32 %v416_v1, %v2691_v18 }
 0x16c   :  { %527 = vadd.xlane.f32.xlu0 %v526_v44  ;;  %v586_v44 = vsel %vm140_vm0, %v470_v39, 0.0  ;;  %v709_v9 = vmul.f32 %v2703_v33, %v701_v5  ;;  %v715_v23 = vmul.f32 %v2703_v33, %v707_v20  ;;  %v712_v25 = vmul.f32 %v704_v21, %v2705_v35  ;;  %v421_v39 = vld [vmem:[#allocation8 + $0x148] sm:$0xff]  ;;  %v430_v5 = vld [vmem:[#allocation8 + $0x190] sm:$0xff] }
 0x16d   :  { %v613_v3 = vsel %vm140_vm0, %v479_v61, 0.0  ;;  %v610_v6 = vsel %vm140_vm0, %v478_v63, 0.0  ;;  %v616_v11 = vsel %vm140_vm0, %v480_v7, 0.0  ;;  %v710_v29 = vmul.f32 %v702_v26, %v2705_v35  ;;  %v428_v63 = vld [vmem:[#allocation8 + $0x180] sm:$0xff] }
 0x16e   :  { %v719_v15 = vsel %vm140_vm0, %v709_v9, 0.0  ;;  %v714_v31 = vmul.f32 %v706_v27, %v2705_v35  ;;  %v494_v9 = vmul.f32 %v430_v5, %v2691_v18 }
 0x16f   :  { %536 = vadd.xlane.f32.xlu1 %v535_v48  ;;  %v595_v48 = vsel %vm140_vm0, %v473_v43, 0.0  ;;  %v722_v34 = vsel %vm140_vm0, %v710_v29, 0.0  ;;  %v484_v43 = vmul.f32 %v420_v40, %v2691_v18 }
 0x170   :  { %533 = vadd.xlane.f32.xlu0 %v532_v50  ;;  %v592_v50 = vsel %vm140_vm0, %v472_v45, 0.0  ;;  %v734_v37 = vsel %vm140_vm0, %v714_v31, 0.0  ;;  %v422_v45 = vld [vmem:[#allocation8 + $0x150] sm:$0xff] }
 0x171   :  { %v438_v31 = vld [vmem:[#allocation8 + $0x1d0] sm:$0xff] }
 0x173   :  { %542 = vadd.xlane.f32.xlu1 %v541_v54  ;;  %v601_v54 = vsel %vm140_vm0, %v475_v49, 0.0  ;;  %v486_v49 = vmul.f32 %v422_v45, %v2691_v18 }
 0x174   :  { %539 = vadd.xlane.f32.xlu0 %v538_v56  ;;  %v598_v56 = vsel %vm140_vm0, %v474_v51, 0.0  ;;  %v424_v51 = vld [vmem:[#allocation8 + $0x160] sm:$0xff] }
 0x177   :  { %548 = vadd.xlane.f32.xlu1 %v547_v60  ;;  %v607_v60 = vsel %vm140_vm0, %v477_v55, 0.0  ;;  %v488_v55 = vmul.f32 %v424_v51, %v2691_v18 }
 0x178   :  { %545 = vadd.xlane.f32.xlu0 %v544_v62  ;;  %v604_v62 = vsel %vm140_vm0, %v476_v57, 0.0  ;;  %v426_v57 = vld [vmem:[#allocation8 + $0x170] sm:$0xff] }
 0x179   :  { %v490_v61 = vmul.f32 %v426_v57, %v2691_v18 }
 0x17b   :  { %554 = vadd.xlane.f32.xlu1 %v553_v2  ;;  %v703_v2 = vld [vmem:[#allocation5 + $0x18] sm:$0xff] }
 0x17c   :  { %551 = vadd.xlane.f32.xlu0 %v550_v4  ;;  %v481_v4 = vmul.f32 %v2689_v16, %v417_v0 }
 0x17f   :  { %560 = vadd.xlane.f32.xlu1 %v559_v8  ;;  %v711_v8 = vmul.f32 %v2703_v33, %v703_v2  ;;  %v646_v2 = vsel %vm140_vm0, %v490_v61, 0.0 }
 0x180   :  { %557 = vadd.xlane.f32.xlu0 %v556_v10  ;;  %v619_v10 = vsel %vm140_vm0, %v481_v4, 0.0  ;;  %v431_v4 = vld [vmem:[#allocation8 + $0x198] sm:$0xff] }
 0x181   :  { %v725_v13 = vsel %vm140_vm0, %v711_v8, 0.0  ;;  %v495_v7 = vmul.f32 %v2689_v16, %v431_v4 }
 0x183   :  { %566 = vadd.xlane.f32.xlu1 %v565_v14  ;;  %v700_v14 = vld [vmem:[#allocation5] sm:$0xff] }
 0x184   :  { %563 = vadd.xlane.f32.xlu0 %v562_v17  ;;  %v713_v17 = vmul.f32 %v2703_v33, %v705_v12  ;;  %v708_v19 = vmul.f32 %v700_v14, %v2705_v35  ;;  %v418_v33 = vld [vmem:[#allocation8 + $0x130] sm:$0xff]  ;;  %v661_v12 = vsel %vm140_vm0, %v495_v7, 0.0  ;;  %v658_v14 = vsel %vm140_vm0, %v494_v9, 0.0 }
 0x187   :  { %572 = vadd.xlane.f32.xlu1 %v571_v22  ;;  %v731_v22 = vsel %vm140_vm0, %v713_v17, 0.0  ;;  %v435_v17 = vld [vmem:[#allocation8 + $0x1b8] sm:$0xff] }
 0x188   :  { %569 = vadd.xlane.f32.xlu0 %v568_v24  ;;  %v716_v24 = vsel %vm140_vm0, %v708_v19, 0.0  ;;  %v434_v19 = vld [vmem:[#allocation8 + $0x1b0] sm:$0xff]  ;;  %v499_v21 = vmul.f32 %v2689_v16, %v435_v17 }
 0x18a   :  { %v673_v26 = vsel %vm140_vm0, %v499_v21, 0.0 }
 0x18b   :  { %578 = vadd.xlane.f32.xlu1 %v577_v28  ;;  %v737_v28 = vsel %vm140_vm0, %v715_v23, 0.0  ;;  %v498_v23 = vmul.f32 %v434_v19, %v2691_v18 }
 0x18c   :  { %575 = vadd.xlane.f32.xlu0 %v574_v30  ;;  %v728_v30 = vsel %vm140_vm0, %v712_v25, 0.0  ;;  %v436_v25 = vld [vmem:[#allocation8 + $0x1c0] sm:$0xff] }
 0x18d   :  { %v500_v29 = vmul.f32 %v436_v25, %v2691_v18 }
 0x18f   :  { %584 = vadd.xlane.f32.xlu1 %v583_v36  ;;  %v483_v36 = vmul.f32 %v2689_v16, %v419_v32 }
 0x190   :  { %581 = vadd.xlane.f32.xlu0 %v580_v38  ;;  %v482_v38 = vmul.f32 %v418_v33, %v2691_v18 }
 0x191   :  { %v625_v41 = vsel %vm140_vm0, %v483_v36, 0.0  ;;  %v502_v36 = vmul.f32 %v438_v31, %v2691_v18 }
 0x192   :  { %v622_v35 = vsel %vm140_vm0, %v482_v38, 0.0  ;;  %v440_v38 = vld [vmem:[#allocation8 + $0x1e0] sm:$0xff] }
 0x193   :  { %590 = vadd.xlane.f32.xlu1 %v589_v42  ;;  %v485_v42 = vmul.f32 %v2689_v16, %v421_v39 }
 0x194   :  { %587 = vadd.xlane.f32.xlu0 %v586_v44  ;;  %v423_v44 = vld [vmem:[#allocation8 + $0x158] sm:$0xff] }
 0x195   :  { %v631_v46 = vsel %vm140_vm0, %v485_v42, 0.0  ;;  %v487_v47 = vmul.f32 %v2689_v16, %v423_v44  ;;  %v504_v42 = vmul.f32 %v440_v38, %v2691_v18 }
 0x197   :  { %596 = vadd.xlane.f32.xlu1 %v595_v48  ;;  %v628_v48 = vsel %vm140_vm0, %v484_v43, 0.0  ;;  %v637_v52 = vsel %vm140_vm0, %v487_v47, 0.0  ;;  %v442_v43 = vld [vmem:[#allocation8 + $0x1f0] sm:$0xff] }
 0x198   :  { %593 = vadd.xlane.f32.xlu0 %v592_v50  ;;  %v425_v50 = vld [vmem:[#allocation8 + $0x168] sm:$0xff]  ;;  %v506_v47 = vmul.f32 %v442_v43, %v2691_v18 }
 0x199   :  { %v489_v53 = vmul.f32 %v2689_v16, %v425_v50 }
 0x19b   :  { %602 = vadd.xlane.f32.xlu1 %v601_v54  ;;  %v634_v54 = vsel %vm140_vm0, %v486_v49, 0.0  ;;  %v643_v58 = vsel %vm140_vm0, %v489_v53, 0.0  ;;  %v694_v49 = vsel %vm140_vm0, %v506_v47, 0.0 }
 0x19c   :  { %599 = vadd.xlane.f32.xlu0 %v598_v56  ;;  %v427_v56 = vld [vmem:[#allocation8 + $0x178] sm:$0xff] }
 0x19d   :  { %v491_v59 = vmul.f32 %v2689_v16, %v427_v56 }
 0x19f   :  { %608 = vadd.xlane.f32.xlu1 %v607_v60  ;;  %v640_v60 = vsel %vm140_vm0, %v488_v55, 0.0  ;;  %v649_v0 = vsel %vm140_vm0, %v491_v59, 0.0 }
 0x1a0   :  { %605 = vadd.xlane.f32.xlu0 %v604_v62  ;;  %v429_v62 = vld [vmem:[#allocation8 + $0x188] sm:$0xff] }
 0x1a1   :  { %v493_v1 = vmul.f32 %v2689_v16, %v429_v62 }
 0x1a3   :  { %614 = vadd.xlane.f32.xlu1 %v613_v3  ;;  %v492_v3 = vmul.f32 %v428_v63, %v2691_v18 }
 0x1a4   :  { %611 = vadd.xlane.f32.xlu0 %v610_v6  ;;  %v655_v6 = vsel %vm140_vm0, %v493_v1, 0.0 }
 0x1a5   :  { %v652_v8 = vsel %vm140_vm0, %v492_v3, 0.0 }
 0x1a7   :  { %620 = vadd.xlane.f32.xlu1 %v619_v10  ;;  %v433_v10 = vld [vmem:[#allocation8 + $0x1a8] sm:$0xff] }
 0x1a8   :  { %617 = vadd.xlane.f32.xlu0 %v616_v11  ;;  %v432_v11 = vld [vmem:[#allocation8 + $0x1a0] sm:$0xff] }
 0x1ab   :  { %726 = vadd.xlane.f32.xlu1 %v725_v13  ;;  %v497_v13 = vmul.f32 %v2689_v16, %v433_v10 }
 0x1ac   :  { %720 = vadd.xlane.f32.xlu0 %v719_v15  ;;  %v496_v15 = vmul.f32 %v432_v11, %v2691_v18 }
 0x1ad   :  { %v667_v20 = vsel %vm140_vm0, %v497_v13, 0.0 }
 0x1af   :  { %732 = vadd.xlane.f32.xlu1 %v731_v22  ;;  %v664_v22 = vsel %vm140_vm0, %v496_v15, 0.0 }
 0x1b0   :  { %717 = vadd.xlane.f32.xlu0 %v716_v24  ;;  %v437_v24 = vld [vmem:[#allocation8 + $0x1c8] sm:$0xff] }
 0x1b1   :  { %v501_v27 = vmul.f32 %v2689_v16, %v437_v24 }
 0x1b3   :  { %738 = vadd.xlane.f32.xlu1 %v737_v28  ;;  %v670_v28 = vsel %vm140_vm0, %v498_v23, 0.0  ;;  %v679_v32 = vsel %vm140_vm0, %v501_v27, 0.0 }
 0x1b4   :  { %729 = vadd.xlane.f32.xlu0 %v728_v30  ;;  %v439_v30 = vld [vmem:[#allocation8 + $0x1d8] sm:$0xff] }
 0x1b5   :  { %v503_v33 = vmul.f32 %v2689_v16, %v439_v30 }
 0x1b7   :  { %723 = vadd.xlane.f32.xlu1 %v722_v34  ;;  %v676_v34 = vsel %vm140_vm0, %v500_v29, 0.0  ;;  %v685_v39 = vsel %vm140_vm0, %v503_v33, 0.0  ;;  %v2874_v29 = vld [vmem:[%s3413_s4] sm:$0xff] }
 0x1b8   :  { %735 = vadd.xlane.f32.xlu0 %v734_v37  ;;  %v441_v37 = vld [vmem:[#allocation8 + $0x1e8] sm:$0xff]  ;;  %vm744_vm9 = vcmp.eq.s32.totalorder %v2874_v29, 0 }
 0x1b9   :  { %v505_v40 = vmul.f32 %v2689_v16, %v441_v37 }
 0x1bb   :  { %626 = vadd.xlane.f32.xlu1 %v625_v41  ;;  %v682_v41 = vsel %vm140_vm0, %v502_v36, 0.0  ;;  %v691_v44 = vsel %vm140_vm0, %v505_v40, 0.0 }
 0x1bc   :  { %623 = vadd.xlane.f32.xlu0 %v622_v35  ;;  %v443_v35 = vld [vmem:[#allocation8 + $0x1f8] sm:$0xff] }
 0x1bd   :  { %v507_v45 = vmul.f32 %v2689_v16, %v443_v35 }
 0x1bf   :  { %632 = vadd.xlane.f32.xlu1 %v631_v46  ;;  %v688_v46 = vsel %vm140_vm0, %v504_v42, 0.0 }
 0x1c0   :  { %629 = vadd.xlane.f32.xlu0 %v628_v48  ;;  %v697_v48 = vsel %vm140_vm0, %v507_v45, 0.0 }
 0x1c3   :  { %638 = vadd.xlane.f32.xlu1 %v637_v52 }
 0x1c4   :  { %635 = vadd.xlane.f32.xlu0 %v634_v54  ;;  %v814_v54 = vlaneseq }
 0x1c6   :  { %v815_v16 = vand.u32 127, %v814_v54  ;;  %v2841_v59 = vshrl.u32 %v814_v54, 7 }
 0x1c7   :  { %644 = vadd.xlane.f32.xlu1 %v643_v58 }
 0x1c8   :  { %641 = vadd.xlane.f32.xlu0 %v640_v60  ;;  %v820_v18 = vadd.s32 4294967288, %v815_v16  ;;  %v2847_v63 = vsub.s32 %v815_v16, %v2841_v59 }
 0x1ca   :  { %v2844_v62 = vsub.s32 %v820_v18, %v2841_v59 }
 0x1cb   :  { %650 = vadd.xlane.f32.xlu1 %v649_v0 }
 0x1cc   :  { %647 = vadd.xlane.f32.xlu0 %v646_v2 }
 0x1cf   :  { %656 = vadd.xlane.f32.xlu1 %v655_v6 }
 0x1d0   :  { %653 = vadd.xlane.f32.xlu0 %v652_v8 }
 0x1d3   :  { %662 = vadd.xlane.f32.xlu1 %v661_v12 }
 0x1d4   :  { %659 = vadd.xlane.f32.xlu0 %v658_v14 }
 0x1d7   :  { %668 = vadd.xlane.f32.xlu1 %v667_v20 }
 0x1d8   :  { %665 = vadd.xlane.f32.xlu0 %v664_v22 }
 0x1db   :  { %674 = vadd.xlane.f32.xlu1 %v673_v26 }
 0x1dc   :  { %671 = vadd.xlane.f32.xlu0 %v670_v28 }
 0x1df   :  { %680 = vadd.xlane.f32.xlu1 %v679_v32 }
 0x1e0   :  { %677 = vadd.xlane.f32.xlu0 %v676_v34 }
 0x1e3   :  { %686 = vadd.xlane.f32.xlu1 %v685_v39 }
 0x1e4   :  { %683 = vadd.xlane.f32.xlu0 %v682_v41 }
 0x1e7   :  { %692 = vadd.xlane.f32.xlu1 %v691_v44 }
 0x1e8   :  { %689 = vadd.xlane.f32.xlu0 %v688_v46 }
 0x1eb   :  { %698 = vadd.xlane.f32.xlu1 %v697_v48 }
 0x1ec   :  { %v513_v50 = vpop.xlane.xlu1 %512  ;;  %695 = vadd.xlane.f32.xlu0 %v694_v49 }
 0x1ed   :  { %v510_v51 = vpop.xlane.xlu0 %509  ;;  %v824_v6 = vrot.slane %v513_v50, %v2844_v62 }
 0x1ee   :  { %v819_v7 = vrot.slane %v510_v51, %v2847_v63 }
 0x1f0   :  { %v519_v52 = vpop.xlane.xlu1 %518  ;;  %v826_v21 = vsel %vm825_vm1, %v824_v6, %v819_v7 }
 0x1f1   :  { %v516_v53 = vpop.xlane.xlu0 %515  ;;  %v834_v0 = vrot.slane %v519_v52, %v2844_v62 }
 0x1f2   :  { %v830_v1 = vrot.slane %v516_v53, %v2847_v63 }
 0x1f4   :  { %v525_v55 = vpop.xlane.xlu1 %524  ;;  %v835_v12 = vsel %vm825_vm1, %v834_v0, %v830_v1 }
 0x1f5   :  { %v522_v56 = vpop.xlane.xlu0 %521  ;;  %v843_v3 = vrot.slane %v525_v55, %v2844_v62  ;;  %v1107_v24 = vsel %vm1106_vm2, %v835_v12, %v826_v21 }
 0x1f6   :  { %v839_v4 = vrot.slane %v522_v56, %v2847_v63 }
 0x1f8   :  { %v531_v57 = vpop.xlane.xlu1 %530  ;;  %v844_v17 = vsel %vm825_vm1, %v843_v3, %v839_v4 }
 0x1f9   :  { %v528_v58 = vpop.xlane.xlu0 %527  ;;  %v852_v8 = vrot.slane %v531_v57, %v2844_v62  ;;  %v1109_v26 = vsel %vm1108_vm3, %v844_v17, %v1107_v24 }
 0x1fa   :  { %v848_v9 = vrot.slane %v528_v58, %v2847_v63 }
 0x1fc   :  { %v537_v60 = vpop.xlane.xlu1 %536  ;;  %v853_v22 = vsel %vm825_vm1, %v852_v8, %v848_v9 }
 0x1fd   :  { %v534_v61 = vpop.xlane.xlu0 %533  ;;  %v861_v10 = vrot.slane %v537_v60, %v2844_v62  ;;  %v1111_v30 = vsel %vm1110_vm4, %v853_v22, %v1109_v26  ;;  %v2914_v26 = vld [vmem:[%s3413_s4 + $0x8] sm:$0xff] }
 0x1fe   :  { %v857_v11 = vrot.slane %v534_v61, %v2847_v63  ;;  %vm745_vm11 = vcmp.eq.s32.totalorder %v2914_v26, 0 }
 0x200   :  { %v543_v2 = vpop.xlane.xlu1 %542  ;;  %v862_v25 = vsel %vm825_vm1, %v861_v10, %v857_v11 }
 0x201   :  { %v540_v5 = vpop.xlane.xlu0 %539  ;;  %v870_v13 = vrot.slane %v543_v2, %v2844_v62  ;;  %v1113_v34 = vsel %vm1112_vm5, %v862_v25, %v1111_v30 }
 0x202   :  { %v866_v14 = vrot.slane %v540_v5, %v2847_v63 }
 0x204   :  { %v549_v15 = vpop.xlane.xlu1 %548  ;;  %v871_v27 = vsel %vm825_vm1, %v870_v13, %v866_v14 }
 0x205   :  { %v879_v19 = vrot.slane %v549_v15, %v2844_v62  ;;  %v546_v20 = vpop.xlane.xlu0 %545  ;;  %v1115_v37 = vsel %vm1114_vm6, %v871_v27, %v1113_v34 }
 0x206   :  { %v875_v23 = vrot.slane %v546_v20, %v2847_v63 }
 0x208   :  { %v555_v28 = vpop.xlane.xlu1 %554  ;;  %v880_v31 = vsel %vm825_vm1, %v879_v19, %v875_v23 }
 0x209   :  { %v888_v32 = vrot.slane %v555_v28, %v2844_v62  ;;  %v552_v33 = vpop.xlane.xlu0 %551  ;;  %v1117_v38 = vsel %vm1116_vm7, %v880_v31, %v1115_v37 }
 0x20a   :  { %v884_v36 = vrot.slane %v552_v33, %v2847_v63 }
 0x20c   :  { %v889_v39 = vsel %vm825_vm1, %v888_v32, %v884_v36  ;;  %v561_v40 = vpop.xlane.xlu1 %560 }
 0x20d   :  { %v1119_v41 = vsel %vm1118_vm8, %v889_v39, %v1117_v38  ;;  %v558_v42 = vpop.xlane.xlu0 %557  ;;  %v897_v3 = vrot.slane %v561_v40, %v2844_v62 }
 0x20e   :  { %v1145_v35 = vsel %vm744_vm9, %v1119_v41, -1e+30  ;;  %v893_v4 = vrot.slane %v558_v42, %v2847_v63 }
 0x20f   :  { %v1150_v43 = vsel %vm1149_vm10, %v1145_v35, -inf }
 0x210   :  { %v1151_v44 = vrot.slane %v1150_v43, 4  ;;  %v567_v45 = vpop.xlane.xlu1 %566  ;;  %v898_v17 = vsel %vm825_vm1, %v897_v3, %v893_v4 }
 0x211   :  { %v564_v46 = vpop.xlane.xlu0 %563  ;;  %v906_v18 = vrot.slane %v567_v45, %v2844_v62 }
 0x212   :  { %v1152_v47 = vmax.f32 %v1150_v43, %v1151_v44  ;;  %v902_v60 = vrot.slane %v564_v46, %v2847_v63 }
 0x214   :  { %v1153_v48 = vrot.slane %v1152_v47, 2  ;;  %v573_v49 = vpop.xlane.xlu1 %572  ;;  %v907_v9 = vsel %vm825_vm1, %v906_v18, %v902_v60 }
 0x215   :  { %v570_v50 = vpop.xlane.xlu0 %569  ;;  %v915_v0 = vrot.slane %v573_v49, %v2844_v62  ;;  %v1120_v21 = vsel %vm1106_vm2, %v907_v9, %v898_v17 }
 0x216   :  { %v1154_v51 = vmax.f32 %v1152_v47, %v1153_v48  ;;  %v911_v1 = vrot.slane %v570_v50, %v2847_v63 }
 0x218   :  { %v1155_v52 = vrot.slane %v1154_v51, 1  ;;  %v579_v53 = vpop.xlane.xlu1 %578  ;;  %v916_v13 = vsel %vm825_vm1, %v915_v0, %v911_v1 }
 0x219   :  { %v576_v54 = vpop.xlane.xlu0 %575  ;;  %v924_v5 = vrot.slane %v579_v53, %v2844_v62  ;;  %v1121_v23 = vsel %vm1108_vm3, %v916_v13, %v1120_v21  ;;  %v2949_v13 = vld [vmem:[#allocation10] sm:$0xf] }
 0x21a   :  { %v1156_v55 = vmax.f32 %v1154_v51, %v1155_v52  ;;  %v920_v6 = vrot.slane %v576_v54, %v2847_v63  ;;  %vm749_vm13 = vcmp.eq.s32.totalorder %v2949_v13, 0 }
 0x21c   :  { %v1178_v56 = vsub.f32 %v1145_v35, %v1156_v55  ;;  %v585_v16 = vpop.xlane.xlu1 %584  ;;  %v925_v19 = vsel %vm825_vm1, %v924_v5, %v920_v6 }
 0x21d   :  { %v582_v57 = vpop.xlane.xlu0 %581  ;;  %v933_v7 = vrot.slane %v585_v16, %v2844_v62  ;;  %v1122_v27 = vsel %vm1110_vm4, %v925_v19, %v1121_v23 }
 0x21e   :  { %v1182_v58 = vmul.f32 1.442695, %v1178_v56  ;;  %v929_v8 = vrot.slane %v582_v57, %v2847_v63 }
 0x220   :  { %2227 = vpow2.f32 %v1182_v58  ;;  %v591_v61 = vpop.xlane.xlu1 %590  ;;  %v934_v22 = vsel %vm825_vm1, %v933_v7, %v929_v8 }
 0x221   :  { %v588_v2 = vpop.xlane.xlu0 %587  ;;  %v942_v10 = vrot.slane %v591_v61, %v2844_v62  ;;  %v1123_v33 = vsel %vm1112_vm5, %v934_v22, %v1122_v27 }
 0x222   :  { %v938_v11 = vrot.slane %v588_v2, %v2847_v63 }
 0x224   :  { %v597_v12 = vpop.xlane.xlu1 %596  ;;  %v943_v24 = vsel %vm825_vm1, %v942_v10, %v938_v11 }
 0x225   :  { %v951_v14 = vrot.slane %v597_v12, %v2844_v62  ;;  %v594_v15 = vpop.xlane.xlu0 %593  ;;  %v1124_v37 = vsel %vm1114_vm6, %v943_v24, %v1123_v33 }
 0x226   :  { %v947_v20 = vrot.slane %v594_v15, %v2847_v63 }
 0x228   :  { %v603_v25 = vpop.xlane.xlu1 %602  ;;  %v952_v28 = vsel %vm825_vm1, %v951_v14, %v947_v20 }
 0x229   :  { %v960_v30 = vrot.slane %v603_v25, %v2844_v62  ;;  %v600_v31 = vpop.xlane.xlu0 %599  ;;  %v1125_v39 = vsel %vm1116_vm7, %v952_v28, %v1124_v37 }
 0x22a   :  { %v2228_v32 = vpop.eup %2227  ;;  %v956_v34 = vrot.slane %v600_v31, %v2847_v63 }
 0x22b   :  { %v1190_v36 = vsel %vm744_vm9, %v2228_v32, 0.0 }
 0x22c   :  { %v1194_v38 = vsel %vm1149_vm10, %v1190_v36, 0.0  ;;  %v961_v40 = vsel %vm825_vm1, %v960_v30, %v956_v34  ;;  %v2928_v41 = vpop.xlane.xlu1 %608 }
 0x22d   :  { %v1195_v42 = vrot.slane %v1194_v38, 4  ;;  %v1126_v35 = vsel %vm1118_vm8, %v961_v40, %v1125_v39  ;;  %v2931_v43 = vpop.xlane.xlu0 %605 }
 0x22e   :  { %v1146_v29 = vsel %vm745_vm11, %v1126_v35, -1e+30 }
 0x22f   :  { %v1196_v44 = vadd.f32 %v1195_v42, %v1194_v38  ;;  %v1157_v45 = vsel %vm1149_vm10, %v1146_v29, -inf }
 0x230   :  { %v1158_v46 = vrot.slane %v1157_v45, 4  ;;  %v2936_v47 = vpop.xlane.xlu1 %614 }
 0x231   :  { %v1197_v48 = vrot.slane %v1196_v44, 2  ;;  %v2938_v49 = vpop.xlane.xlu0 %611  ;;  %v978_v35 = vrot.slane %v2936_v47, %v2844_v62 }
 0x232   :  { %v1159_v50 = vmax.f32 %v1157_v45, %v1158_v46  ;;  %v974_v26 = vrot.slane %v2938_v49, %v2847_v63  ;;  %v969_v45 = vrot.slane %v2928_v41, %v2844_v62  ;;  %v965_v46 = vrot.slane %v2931_v43, %v2847_v63 }
 0x233   :  { %v1198_v51 = vadd.f32 %v1197_v48, %v1196_v44 }
 0x234   :  { %v1160_v52 = vrot.slane %v1159_v50, 2  ;;  %v2940_v53 = vpop.xlane.xlu1 %620 }
 0x235   :  { %v1199_v54 = vrot.slane %v1198_v51, 1  ;;  %v2942_v55 = vpop.xlane.xlu0 %617  ;;  %v987_v48 = vrot.slane %v2940_v53, %v2844_v62  ;;  %v970_v53 = vsel %vm825_vm1, %v969_v45, %v965_v46 }
 0x236   :  { %v1161_v56 = vmax.f32 %v1159_v50, %v1160_v52  ;;  %v983_v50 = vrot.slane %v2942_v55, %v2847_v63 }
 0x237   :  { %v1200_v16 = vadd.f32 %v1199_v54, %v1198_v51 }
 0x238   :  { %v1162_v57 = vrot.slane %v1161_v56, 1  ;;  %v727_v58 = vpop.xlane.xlu1 %726  ;;  %v988_v55 = vsel %vm825_vm1, %v987_v48, %v983_v50 }
 0x239   :  { %vm1222_vm12 = vcmp.gt.f32.partialorder %v1200_v16, 0.0  ;;  %v721_v18 = vpop.xlane.xlu0 %720  ;;  %v1262_v10 = vrot.slane %v727_v58, %v2844_v62 }
 0x23a   :  { %v1226_v60 = vsel %vm1222_vm12, %v1200_v16, 1.0  ;;  %v1163_v61 = vmax.f32 %v1161_v56, %v1162_v57  ;;  %v1253_v11 = vrot.slane %v721_v18, %v2844_v62  ;;  %v979_v16 = vsel %vm825_vm1, %v978_v35, %v974_v26 }
 0x23b   :  { %2229 = vrcp.f32 %v1226_v60 }
 0x23c   :  { %v1179_v0 = vsub.f32 %v1146_v29, %v1163_v61  ;;  %v733_v1 = vpop.xlane.xlu1 %732 }
 0x23d   :  { %v718_v2 = vpop.xlane.xlu0 %717  ;;  %v1271_v17 = vrot.slane %v733_v1, %v2844_v62 }
 0x23e   :  { %v1184_v3 = vmul.f32 1.442695, %v1179_v0  ;;  %v1249_v6 = vrot.slane %v718_v2, %v2847_v63 }
 0x240   :  { %2231 = vpow2.f32 %v1184_v3  ;;  %v739_v4 = vpop.xlane.xlu1 %738  ;;  %v1254_v21 = vsel %vm825_vm1, %v1253_v11, %v1249_v6 }
 0x241   :  { %v730_v5 = vpop.xlane.xlu0 %729  ;;  %v1280_v19 = vrot.slane %v739_v4, %v2844_v62 }
 0x242   :  { %v1267_v7 = vrot.slane %v730_v5, %v2847_v63  ;;  %v1127_v5 = vsel %vm1106_vm2, %v979_v16, %v970_v53 }
 0x244   :  { %v724_v8 = vpop.xlane.xlu1 %723  ;;  %v1272_v23 = vsel %vm825_vm1, %v1271_v17, %v1267_v7  ;;  %v3010_v17 = vld [vmem:[%s3413_s4 + $0x10] sm:$0xff] }
 0x245   :  { %v2230_v9 = vpop.eup %2229  ;;  %v1258_v12 = vrot.slane %v724_v8, %v2847_v63  ;;  %v736_v14 = vpop.xlane.xlu0 %735  ;;  %v1128_v8 = vsel %vm1108_vm3, %v988_v55, %v1127_v5  ;;  %vm746_vm9 = vcmp.eq.s32.totalorder %v3010_v17, 0 }
 0x246   :  { %v2951_v15 = vmul.f32 %v2230_v9, %v1190_v36  ;;  %v1276_v20 = vrot.slane %v736_v14, %v2847_v63 }
 0x247   :  { %v1263_v22 = vsel %vm825_vm1, %v1262_v10, %v1258_v12 }
 0x248   :  { %2059 = vst.msk [vmem:[%s3422_s13] sm:$0xff] %vm1149_vm10, %v2951_v15  ;;  %v1282_v24 = vsel %vm1106_vm2, %v1263_v22, %v1254_v21  ;;  %v1281_v25 = vsel %vm825_vm1, %v1280_v19, %v1276_v20  ;;  %v627_v27 = vpop.xlane.xlu1 %626 }
 0x249   :  { %v1283_v28 = vsel %vm1108_vm3, %v1272_v23, %v1282_v24  ;;  %v624_v30 = vpop.xlane.xlu0 %623  ;;  %v996_v54 = vrot.slane %v627_v27, %v2844_v62 }
 0x24a   :  { %v2232_v31 = vpop.eup %2231  ;;  %v1284_v32 = vsel %vm1110_vm4, %v1281_v25, %v1283_v28  ;;  %v992_v49 = vrot.slane %v624_v30, %v2847_v63 }
 0x24b   :  { %v2971_v33 = vsel %vm745_vm11, %v2232_v31, 0.0  ;;  %v1286_v34 = vsel %vm749_vm13, %v1284_v32, -1e+30 }
 0x24c   :  { %v1201_v36 = vsel %vm1149_vm10, %v2971_v33, 0.0  ;;  %v1288_v37 = vsel %vm1287_vm14, %v1286_v34, -inf  ;;  %v633_v38 = vpop.xlane.xlu1 %632  ;;  %v997_v2 = vsel %vm825_vm1, %v996_v54, %v992_v49 }
 0x24d   :  { %v1202_v39 = vrot.slane %v1201_v36, 4  ;;  %v1289_v40 = vrot.slane %v1288_v37, 4  ;;  %v630_v42 = vpop.xlane.xlu0 %629  ;;  %v1005_v43 = vrot.slane %v633_v38, %v2844_v62  ;;  %v1129_v11 = vsel %vm1110_vm4, %v997_v2, %v1128_v8 }
 0x24e   :  { %v1001_v58 = vrot.slane %v630_v42, %v2847_v63 }
 0x24f   :  { %v1203_v29 = vadd.f32 %v1202_v39, %v1201_v36  ;;  %v1290_v44 = vmax.f32 %v1288_v37, %v1289_v40 }
 0x250   :  { %v639_v51 = vpop.xlane.xlu1 %638  ;;  %v1006_v10 = vsel %vm825_vm1, %v1005_v43, %v1001_v58 }
 0x251   :  { %v1204_v52 = vrot.slane %v1203_v29, 2  ;;  %v1291_v47 = vrot.slane %v1290_v44, 2  ;;  %v636_v56 = vpop.xlane.xlu0 %635  ;;  %v1014_v18 = vrot.slane %v639_v51, %v2844_v62  ;;  %v1130_v24 = vsel %vm1112_vm5, %v1006_v10, %v1129_v11 }
 0x252   :  { %v1010_v60 = vrot.slane %v636_v56, %v2847_v63 }
 0x253   :  { %v1205_v41 = vadd.f32 %v1204_v52, %v1203_v29  ;;  %v1292_v57 = vmax.f32 %v1290_v44, %v1291_v47 }
 0x254   :  { %v645_v61 = vpop.xlane.xlu1 %644  ;;  %v1015_v12 = vsel %vm825_vm1, %v1014_v18, %v1010_v60 }
 0x255   :  { %v1206_v0 = vrot.slane %v1205_v41, 1  ;;  %v1293_v1 = vrot.slane %v1292_v57, 1  ;;  %v1023_v3 = vrot.slane %v645_v61, %v2844_v62  ;;  %v642_v4 = vpop.xlane.xlu0 %641  ;;  %v1131_v28 = vsel %vm1114_vm6, %v1015_v12, %v1130_v24 }
 0x256   :  { %v1019_v6 = vrot.slane %v642_v4, %v2847_v63 }
 0x257   :  { %v1207_v7 = vadd.f32 %v1206_v0, %v1205_v41  ;;  %v1294_v9 = vmax.f32 %v1292_v57, %v1293_v1 }
 0x258   :  { %v651_v14 = vpop.xlane.xlu1 %650  ;;  %v1024_v20 = vsel %vm825_vm1, %v1023_v3, %v1019_v6 }
 0x259   :  { %vm1223_vm15 = vcmp.gt.f32.partialorder %v1207_v7, 0.0  ;;  %v1295_v19 = vsub.f32 %v1286_v34, %v1294_v9  ;;  %v1032_v21 = vrot.slane %v651_v14, %v2844_v62  ;;  %v648_v22 = vpop.xlane.xlu0 %647  ;;  %v1132_v30 = vsel %vm1116_vm7, %v1024_v20, %v1131_v28 }
 0x25a   :  { %v1227_v23 = vsel %vm1223_vm15, %v1207_v7, 1.0  ;;  %v1028_v25 = vrot.slane %v648_v22, %v2847_v63 }
 0x25b   :  { %2233 = vrcp.f32 %v1227_v23  ;;  %v1296_v27 = vmul.f32 1.442695, %v1295_v19 }
 0x25c   :  { %v1033_v31 = vsel %vm825_vm1, %v1032_v21, %v1028_v25  ;;  %v657_v32 = vpop.xlane.xlu1 %656 }
 0x25d   :  { %2235 = vpow2.f32 %v1296_v27  ;;  %v1133_v34 = vsel %vm1118_vm8, %v1033_v31, %v1132_v30  ;;  %v654_v36 = vpop.xlane.xlu0 %653  ;;  %v1041_v61 = vrot.slane %v657_v32, %v2844_v62 }
 0x25e   :  { %v1147_v37 = vsel %vm746_vm9, %v1133_v34, -1e+30  ;;  %v1037_v4 = vrot.slane %v654_v36, %v2847_v63  ;;  %v3063_v34 = vld [vmem:[%s3413_s4 + $0x18] sm:$0xff]  ;;  %v2471_v36 = vmov 1966171168  }
 0x25f   :  { %v1164_v38 = vsel %vm1149_vm10, %v1147_v37, -inf }
 0x260   :  { %v1165_v39 = vrot.slane %v1164_v38, 4  ;;  %v663_v40 = vpop.xlane.xlu1 %662  ;;  %v1042_v22 = vsel %vm825_vm1, %v1041_v61, %v1037_v4 }
 0x261   :  { %v660_v42 = vpop.xlane.xlu0 %659  ;;  %v1050_v13 = vrot.slane %v663_v40, %v2844_v62 }
 0x262   :  { %v1166_v35 = vmax.f32 %v1164_v38, %v1165_v39  ;;  %v1046_v18 = vrot.slane %v660_v42, %v2847_v63 }
 0x264   :  { %v1167_v26 = vrot.slane %v1166_v35, 2  ;;  %v669_v29 = vpop.xlane.xlu1 %668  ;;  %v1051_v10 = vsel %vm825_vm1, %v1050_v13, %v1046_v18 }
 0x265   :  { %v2234_v44 = vpop.eup %2233  ;;  %v666_v45 = vpop.xlane.xlu0 %665  ;;  %v1059_v0 = vrot.slane %v669_v29, %v2844_v62  ;;  %v1134_v27 = vsel %vm1106_vm2, %v1051_v10, %v1042_v22  ;;  %vm747_vm2 = vcmp.eq.s32.totalorder %v3063_v34, 0 }
 0x266   :  { %v3025_v46 = vmul.f32 %v2234_v44, %v2971_v33  ;;  %v1168_v48 = vmax.f32 %v1166_v35, %v1167_v26  ;;  %v1055_v1 = vrot.slane %v666_v45, %v2847_v63 }
 0x267   :  { %v2236_v50 = vpop.eup %2235 }
 0x268   :  { %2060 = vst.msk [vmem:[%s3422_s13 + $0x8] sm:$0xff] %vm1149_vm10, %v3025_v46  ;;  %v3034_v51 = vsel %vm749_vm13, %v2236_v50, 0.0  ;;  %v1169_v52 = vrot.slane %v1168_v48, 1  ;;  %v675_v47 = vpop.xlane.xlu1 %674  ;;  %v1060_v19 = vsel %vm825_vm1, %v1059_v0, %v1055_v1 }
 0x269   :  { %v1299_v54 = vsel %vm1287_vm14, %v3034_v51, 0.0  ;;  %v672_v49 = vpop.xlane.xlu0 %671  ;;  %v1068_v5 = vrot.slane %v675_v47, %v2844_v62  ;;  %v1135_v30 = vsel %vm1108_vm3, %v1060_v19, %v1134_v27 }
 0x26a   :  { %v1300_v33 = vrot.slane %v1299_v54, 4  ;;  %v1170_v56 = vmax.f32 %v1168_v48, %v1169_v52  ;;  %v1064_v6 = vrot.slane %v672_v49, %v2847_v63 }
 0x26c   :  { %v1301_v16 = vadd.f32 %v1300_v33, %v1299_v54  ;;  %v1180_v41 = vsub.f32 %v1147_v37, %v1170_v56  ;;  %v681_v57 = vpop.xlane.xlu1 %680  ;;  %v1069_v23 = vsel %vm825_vm1, %v1068_v5, %v1064_v6  ;;  %v1312_v37 = vunpack.c.l.s4 %v2471_v36 }
 0x26d   :  { %v678_v43 = vpop.xlane.xlu0 %677  ;;  %v1077_v7 = vrot.slane %v681_v57, %v2844_v62  ;;  %v1136_v38 = vsel %vm1110_vm4, %v1069_v23, %v1135_v30  ;;  %v1405_v23 = vsub.s32 4, %v2841_v59  ;;  %v1416_v30 = vsub.s32 5, %v2841_v59 }
 0x26e   :  { %v1302_v58 = vrot.slane %v1301_v16, 2  ;;  %v1186_v53 = vmul.f32 1.442695, %v1180_v41  ;;  %v1073_v8 = vrot.slane %v678_v43, %v2847_v63  ;;  %v1438_v36 = vsub.s32 7, %v2841_v59 }
 0x270   :  { %v1303_v55 = vadd.f32 %v1302_v58, %v1301_v16  ;;  %2237 = vpow2.f32 %v1186_v53  ;;  %v687_v60 = vpop.xlane.xlu1 %686  ;;  %v1078_v28 = vsel %vm825_vm1, %v1077_v7, %v1073_v8 }
 0x271   :  { %v684_v2 = vpop.xlane.xlu0 %683  ;;  %v1086_v11 = vrot.slane %v687_v60, %v2844_v62  ;;  %v1137_v26 = vsel %vm1112_vm5, %v1078_v28, %v1136_v38 }
 0x272   :  { %v1304_v3 = vrot.slane %v1303_v55, 1  ;;  %v1082_v12 = vrot.slane %v684_v2, %v2847_v63 }
 0x274   :  { %v1305_v9 = vadd.f32 %v1304_v3, %v1303_v55  ;;  %v693_v14 = vpop.xlane.xlu1 %692  ;;  %v1087_v31 = vsel %vm825_vm1, %v1086_v11, %v1082_v12  ;;  %v3084_v55 = vsub.s32 0, %v2841_v59 }
 0x275   :  { %v1095_v20 = vrot.slane %v693_v14, %v2844_v62  ;;  %v690_v21 = vpop.xlane.xlu0 %689  ;;  %v1138_v45 = vsel %vm1114_vm6, %v1087_v31, %v1137_v26  ;;  %v3106_v14 = vsub.s32 2, %v2841_v59  ;;  %v1427_v31 = vsub.s32 6, %v2841_v59 }
 0x276   :  { %vm1306_vm11 = vcmp.gt.f32.partialorder %v1305_v9, 0.0  ;;  %v1091_v24 = vrot.slane %v690_v21, %v2847_v63 }
 0x277   :  { %v1307_v25 = vsel %vm1306_vm11, %v1305_v9, 1.0 }
 0x278   :  { %2239 = vrcp.f32 %v1307_v25  ;;  %v699_v32 = vpop.xlane.xlu1 %698  ;;  %v1096_v39 = vsel %vm825_vm1, %v1095_v20, %v1091_v24 }
 0x279   :  { %v1104_v40 = vrot.slane %v699_v32, %v2844_v62  ;;  %v696_v42 = vpop.xlane.xlu0 %695  ;;  %v1139_v50 = vsel %vm1116_vm7, %v1096_v39, %v1138_v45  ;;  %v1313_v62 = vunpack.c.0.s8 %v1312_v37 }
 0x27a   :  { %v2238_v35 = vpop.eup %2237  ;;  %v1100_v29 = vrot.slane %v696_v42, %v2847_v63 }
 0x27b   :  { %v1192_v44 = vsel %vm746_vm9, %v2238_v35, 0.0  ;;  %v1316_v56 = vsub.s32 %v1313_v62, %v2841_v59 }
 0x27c   :  { %v1208_v48 = vsel %vm1149_vm10, %v1192_v44, 0.0  ;;  %v1105_v52 = vsel %vm825_vm1, %v1104_v40, %v1100_v29 }
 0x27d   :  { %v1209_v47 = vrot.slane %v1208_v48, 4  ;;  %v1140_v54 = vsel %vm1118_vm8, %v1105_v52, %v1139_v50 }
 0x27e   :  { %v1148_v63 = vsel %vm747_vm2, %v1140_v54, -1e+30 }
 0x27f   :  { %v1210_v49 = vadd.f32 %v1209_v47, %v1208_v48  ;;  %v1171_v17 = vsel %vm1149_vm10, %v1148_v63, -inf }
 0x280   :  { %v1172_v33 = vrot.slane %v1171_v17, 4 }
 0x281   :  { %v1211_v16 = vrot.slane %v1210_v49, 2 }
 0x282   :  { %v2240_v41 = vpop.eup %2239  ;;  %v1173_v57 = vmax.f32 %v1171_v17, %v1172_v33 }
 0x283   :  { %v1309_v43 = vmul.f32 %v2240_v41, %v3034_v51  ;;  %v1212_v58 = vadd.f32 %v1211_v16, %v1210_v49  ;;  %v3091_v51 = vsub.s32 1, %v2841_v59 }
 0x284   :  { %v1174_v53 = vrot.slane %v1173_v57, 2 }
 0x285   :  { %v1317_v13 = vrot.slane %v1309_v43, %v1316_v56  ;;  %2058 = vst.msk [vmem:[#allocation15] sm:$0xf] %vm1287_vm14, %v1309_v43  ;;  %v1213_v18 = vrot.slane %v1212_v58, 1 }
 0x286   :  { %v1175_v60 = vmax.f32 %v1173_v57, %v1174_v53 }
 0x287   :  { %v1318_v61 = vcombine.high %v1317_v13, %v1317_v13  ;;  %v1325_v0 = vrot.slane %v1317_v13, %v1316_v56  ;;  %v1214_v1 = vadd.f32 %v1213_v18, %v1212_v58 }
 0x288   :  { %v1176_v2 = vrot.slane %v1175_v60, 1 }
 0x289   :  { %v3087_v3 = vrot.slane %v1318_v61, %v1316_v56  ;;  %v1338_v4 = vrot.slane %v1325_v0, %v3084_v55  ;;  %vm1224_vm1 = vcmp.gt.f32.partialorder %v1214_v1, 0.0  ;;  %v1333_v20 = vcombine.high %v1325_v0, %v1325_v0 }
 0x28a   :  { %v1228_v5 = vsel %vm1224_vm1, %v1214_v1, 1.0  ;;  %v1177_v6 = vmax.f32 %v1175_v60, %v1176_v2 }
 0x28b   :  { %v1342_v7 = vrot.slane %v3087_v3, %v3084_v55  ;;  %v1355_v8 = vmul.f32 %v1338_v4, %v2951_v15  ;;  %2241 = vrcp.f32 %v1228_v5  ;;  %v1346_v24 = vrot.slane %v1333_v20, %v3084_v55  ;;  %v2251_v20 = vld [vmem:[#allocation2 + $0x8] sm:$0xff] }
 0x28c   :  { %v1181_v9 = vsub.f32 %v1148_v63, %v1177_v6  ;;  %v1334_v49 = vcombine.high %v3087_v3, %v3087_v3 }
 0x28d   :  { %v3097_v10 = vmul.f32 %v1342_v7, %v3025_v46  ;;  %2054 = vst.msk [vmem:[%s3420_s11] sm:$0xff] %vm1149_vm10, %v1355_v8  ;;  %v1373_v11 = vrot.slane %v1355_v8, %v3091_v51  ;;  %v1362_v12 = vrot.slane %v1355_v8, %v3084_v55  ;;  %v1384_v15 = vrot.slane %v1355_v8, %v3106_v14 }
 0x28e   :  { %v1188_v19 = vmul.f32 1.442695, %v1181_v9  ;;  %v3115_v46 = vsub.s32 3, %v2841_v59  ;;  %v1406_v28 = vrot.slane %v1355_v8, %v1405_v23  ;;  %v1417_v26 = vrot.slane %v1355_v8, %v1416_v30  ;;  %v302_v9 = vld [vmem:[#allocation13 + $0x8] sm:$0xff] }
 0x28f   :  { %2055 = vst.msk [vmem:[%s3420_s11 + $0x8] sm:$0xff] %vm1149_vm10, %v3097_v10  ;;  %1375 = vbcast.lane.b32.xlu1 %v1373_v11, 256  ;;  %1364 = vbcast.lane.b32.xlu0 %v1362_v12, 256  ;;  %v1439_v50 = vrot.slane %v1355_v8, %v1438_v36  ;;  %v1450_v62 = vrot.slane %v3097_v10, %v3084_v55 }
 0x290   :  { %2243 = vpow2.f32 %v1188_v19  ;;  %v1395_v22 = vrot.slane %v1355_v8, %v3115_v46  ;;  %v1461_v54 = vrot.slane %v3097_v10, %v3091_v51  ;;  %v1472_v63 = vrot.slane %v3097_v10, %v3106_v14  ;;  %v1965_v19 = vld [vmem:[#allocation11] sm:$0xff] }
 0x291   :  { %v1483_v33 = vrot.slane %v3097_v10, %v3115_v46  ;;  %v1350_v56 = vrot.slane %v1334_v49, %v3084_v55  ;;  %v1494_v57 = vrot.slane %v3097_v10, %v1405_v23  ;;  %v1505_v18 = vrot.slane %v3097_v10, %v1416_v30  ;;  %v1711_v49 = vld [vmem:[#allocation7] sm:$0xff] }
 0x292   :  { %v1516_v60 = vrot.slane %v3097_v10, %v1427_v31  ;;  %v1527_v61 = vrot.slane %v3097_v10, %v1438_v36 }
 0x293   :  { %1368 = vbcast.lane.b32.xlu1 %v1362_v12, 264  ;;  %1386 = vbcast.lane.b32.xlu0 %v1384_v15, 256 }
 0x295   :  { %v2242_v21 = vpop.eup %2241 }
 0x296   :  { %v1236_v25 = vmul.f32 %v2242_v21, %v1192_v44  ;;  %v1428_v44 = vrot.slane %v1355_v8, %v1427_v31  ;;  %v301_v8 = vld [vmem:[#allocation13] sm:$0xff] }
 0x297   :  { %1379 = vbcast.lane.b32.xlu1 %v1373_v11, 264  ;;  %1397 = vbcast.lane.b32.xlu0 %v1395_v22, 256  ;;  %v2197_v10 = vpack.c.bf16 %v302_v9, %v301_v8 }
 0x298   :  { %v3120_v27 = vmul.f32 %v1346_v24, %v1236_v25  ;;  %2061 = vst.msk [vmem:[%s3422_s13 + $0x10] sm:$0xff] %vm1149_vm10, %v1236_v25  ;;  %v1968_v24 = vld [vmem:[#allocation11 + $0x18] sm:$0xff] }
 0x299   :  { %2198 = vmatprep.subr.bf16.mxu0 %v2197_v10 }
 0x29a   :  { %v2244_v32 = vpop.eup %2243  ;;  %2056 = vst.msk [vmem:[%s3420_s11 + $0x10] sm:$0xff] %vm1149_vm10, %v3120_v27  ;;  %v3137_v38 = vrot.slane %v3120_v27, %v1405_v23  ;;  %v3140_v39 = vrot.slane %v3120_v27, %v1416_v30  ;;  %v3143_v40 = vrot.slane %v3120_v27, %v1427_v31  ;;  %v3147_v35 = vrot.slane %v3120_v27, %v1438_v36 }
 0x29b   :  { %v1193_v37 = vsel %vm747_vm2, %v2244_v32, 0.0  ;;  %1390 = vbcast.lane.b32.xlu1 %v1384_v15, 264  ;;  %1408 = vbcast.lane.b32.xlu0 %v1406_v28, 256  ;;  %v1538_v0 = vrot.slane %v3120_v27, %v3084_v55  ;;  %v1549_v1 = vrot.slane %v3120_v27, %v3091_v51  ;;  %v1560_v2 = vrot.slane %v3120_v27, %v3106_v14  ;;  %v1966_v15 = vld [vmem:[#allocation11 + $0x8] sm:$0xff] }
 0x29c   :  { %v1215_v42 = vsel %vm1149_vm10, %v1193_v37, 0.0  ;;  %v1571_v3 = vrot.slane %v3120_v27, %v3115_v46  ;;  %2200 = vmatpush3.bf16.msra.mxu0 %v2197_v10 }
 0x29d   :  { %v1216_v59 = vrot.slane %v1215_v42, 4 }
 0x29f   :  { %v1217_v34 = vadd.f32 %v1216_v59, %v1215_v42  ;;  %1401 = vbcast.lane.b32.xlu1 %v1395_v22, 264  ;;  %1419 = vbcast.lane.b32.xlu0 %v1417_v26, 256 }
 0x2a1   :  { %v1218_v29 = vrot.slane %v1217_v34, 2 }
 0x2a3   :  { %v1219_v45 = vadd.f32 %v1218_v29, %v1217_v34  ;;  %1412 = vbcast.lane.b32.xlu1 %v1406_v28, 264  ;;  %1430 = vbcast.lane.b32.xlu0 %v1428_v44, 256 }
 0x2a5   :  { %v1220_v48 = vrot.slane %v1219_v45, 1 }
 0x2a7   :  { %v1221_v52 = vadd.f32 %v1220_v48, %v1219_v45  ;;  %1423 = vbcast.lane.b32.xlu1 %v1417_v26, 264  ;;  %1441 = vbcast.lane.b32.xlu0 %v1439_v50, 256 }
 0x2a9   :  { %vm1225_vm3 = vcmp.gt.f32.partialorder %v1221_v52, 0.0 }
 0x2aa   :  { %v1229_v47 = vsel %vm1225_vm3, %v1221_v52, 1.0 }
 0x2ab   :  { %2245 = vrcp.f32 %v1229_v47  ;;  %1434 = vbcast.lane.b32.xlu1 %v1428_v44, 264  ;;  %1452 = vbcast.lane.b32.xlu0 %v1450_v62, 256 }
 0x2af   :  { %1445 = vbcast.lane.b32.xlu1 %v1439_v50, 264  ;;  %1463 = vbcast.lane.b32.xlu0 %v1461_v54, 256 }
 0x2b3   :  { %1456 = vbcast.lane.b32.xlu1 %v1450_v62, 264  ;;  %1474 = vbcast.lane.b32.xlu0 %v1472_v63, 256 }
 0x2b5   :  { %v2246_v17 = vpop.eup %2245 }
 0x2b6   :  { %v1237_v16 = vmul.f32 %v2246_v17, %v1193_v37  ;;  %v1715_v17 = vld [vmem:[#allocation7 + $0x20] sm:$0xff] }
 0x2b7   :  { %1467 = vbcast.lane.b32.xlu1 %v1461_v54, 264  ;;  %1485 = vbcast.lane.b32.xlu0 %v1483_v33, 256 }
 0x2b8   :  { %v1358_v41 = vmul.f32 %v1350_v56, %v1237_v16  ;;  %2062 = vst.msk [vmem:[%s3422_s13 + $0x18] sm:$0xff] %vm1149_vm10, %v1237_v16 }
 0x2ba   :  { %2057 = vst.msk [vmem:[%s3420_s11 + $0x18] sm:$0xff] %vm1149_vm10, %v1358_v41  ;;  %v3169_v43 = vrot.slane %v1358_v41, %v1405_v23  ;;  %v3171_v58 = vrot.slane %v1358_v41, %v1416_v30  ;;  %v3173_v53 = vrot.slane %v1358_v41, %v1427_v31  ;;  %v3175_v13 = vrot.slane %v1358_v41, %v1438_v36  ;;  %v1967_v23 = vld [vmem:[#allocation11 + $0x10] sm:$0xff]  ;;  %s2472_s11 = smov [#allocation15]  }
 0x2bb   :  { %1478 = vbcast.lane.b32.xlu1 %v1472_v63, 264  ;;  %1496 = vbcast.lane.b32.xlu0 %v1494_v57, 256  ;;  %v1626_v4 = vrot.slane %v1358_v41, %v3084_v55  ;;  %v1637_v5 = vrot.slane %v1358_v41, %v3091_v51  ;;  %v1648_v6 = vrot.slane %v1358_v41, %v3106_v14  ;;  %v303_v55 = vld [vmem:[#allocation13 + $0x10] sm:$0xff]  ;;  %v304_v51 = vld [vmem:[#allocation13 + $0x18] sm:$0xff]  ;;  %s2083_s13 = sshll.u32 %s2472_s11, 4  ;;  %s2084_s13 = int_to_ptr.vmem [resolvable:$true] %s2083_s13 }
 0x2bc   :  { %v1659_v7 = vrot.slane %v1358_v41, %v3115_v46  ;;  %v2201_v11 = vpack.c.bf16 %v304_v51, %v303_v55  ;;  %v2205_v46 = vpack.c.bf16 %v1966_v15, %v1965_v19  ;;  %v2209_v25 = vpack.c.bf16 %v1968_v24, %v1967_v23  ;;  %v1713_v63 = vld [vmem:[#allocation7 + $0x10] sm:$0xff]  ;;  %v1720_v23 = vld [vmem:[#allocation7 + $0x48] sm:$0xff]  ;;  %v1727_v24 = vld [vmem:[#allocation7 + $0x80] sm:$0xff]  ;;  %s2406_s26 = scalar_lea.vmem %s2084_s13, 64  ;;  %p2411_p1 = scmp.lt.s32.totalorder %s2084_s13, %s2084_s13 }
 0x2bd   :  { %v1725_v19 = vld [vmem:[#allocation7 + $0x70] sm:$0xff]  ;;  %p2407_p0 = scmp.ne.s32.totalorder %s2084_s13, %s2406_s26  ;;  %p2412_p2 = scmp.lt.s32.totalorder %s2406_s26, %s2406_s26 }
 0x2be   :  { %2202 = vmatprep.subr.bf16.mxu0 %v2201_v11 }
 0x2bf   :  { %1489 = vbcast.lane.b32.xlu1 %v1483_v33, 264  ;;  %1507 = vbcast.lane.b32.xlu0 %v1505_v18, 256  ;;  %p2413_p3 = por %p2412_p2, %p2411_p1 }
 0x2c0   :  { %2204 = vmatpush3.bf16.msra.mxu0 %v2201_v11 }
 0x2c1   :  { %2206 = vmatprep.subr.bf16.mxu0 %v2205_v46  ;;  %p2414_p4 = pnand %p2413_p3, %p2407_p0 }
 0x2c3   :  { %1500 = vbcast.lane.b32.xlu1 %v1494_v57, 264  ;;  %1518 = vbcast.lane.b32.xlu0 %v1516_v60, 256  ;;  %v1717_v57 = vld [vmem:[#allocation7 + $0x30] sm:$0xff] }
 0x2c4   :  { %2168 = vmatmul.mubr.msk.f32.vlgmr.msra.gmra.mrb[0].mxu0 %vm140_vm0, %v2251_v20 }
 0x2c5   :  { %2208 = vmatpush3.bf16.msra.mxu0 %v2205_v46 }
 0x2c6   :  { %2210 = vmatprep.subr.bf16.mxu0 %v2209_v25 }
 0x2c7   :  { %1511 = vbcast.lane.b32.xlu1 %v1505_v18, 264  ;;  %1529 = vbcast.lane.b32.xlu0 %v1527_v61, 256 }
 0x2c9   :  { %2212 = vmatpush3.bf16.msra.mxu0 %v2209_v25 }
 0x2cb   :  { %1522 = vbcast.lane.b32.xlu1 %v1516_v60, 264  ;;  %1540 = vbcast.lane.b32.xlu0 %v1538_v0, 256 }
 0x2cf   :  { %1533 = vbcast.lane.b32.xlu1 %v1527_v61, 264  ;;  %1551 = vbcast.lane.b32.xlu0 %v1549_v1, 256 }
 0x2d3   :  { %1544 = vbcast.lane.b32.xlu1 %v1538_v0, 264  ;;  %1562 = vbcast.lane.b32.xlu0 %v1560_v2, 256  ;;  %v1714_v0 = vld [vmem:[#allocation7 + $0x18] sm:$0xff] }
 0x2d7   :  { %1555 = vbcast.lane.b32.xlu1 %v1549_v1, 264  ;;  %1573 = vbcast.lane.b32.xlu0 %v1571_v3, 256  ;;  %v1721_v1 = vld [vmem:[#allocation7 + $0x50] sm:$0xff] }
 0x2db   :  { %1566 = vbcast.lane.b32.xlu1 %v1560_v2, 264  ;;  %1584 = vbcast.lane.b32.xlu0 %v3137_v38, 256  ;;  %v1712_v2 = vld [vmem:[#allocation7 + $0x8] sm:$0xff] }
 0x2df   :  { %1577 = vbcast.lane.b32.xlu1 %v1571_v3, 264  ;;  %1595 = vbcast.lane.b32.xlu0 %v3140_v39, 256 }
 0x2e3   :  { %1588 = vbcast.lane.b32.xlu1 %v3137_v38, 264  ;;  %1606 = vbcast.lane.b32.xlu0 %v3143_v40, 256 }
 0x2e7   :  { %1599 = vbcast.lane.b32.xlu1 %v3140_v39, 264  ;;  %1617 = vbcast.lane.b32.xlu0 %v3147_v35, 256 }
 0x2eb   :  { %1610 = vbcast.lane.b32.xlu1 %v3143_v40, 264  ;;  %1628 = vbcast.lane.b32.xlu0 %v1626_v4, 256 }
 0x2ef   :  { %1621 = vbcast.lane.b32.xlu1 %v3147_v35, 264  ;;  %1639 = vbcast.lane.b32.xlu0 %v1637_v5, 256 }
 0x2f3   :  { %1632 = vbcast.lane.b32.xlu1 %v1626_v4, 264  ;;  %1650 = vbcast.lane.b32.xlu0 %v1648_v6, 256 }
 0x2f7   :  { %1643 = vbcast.lane.b32.xlu1 %v1637_v5, 264  ;;  %1661 = vbcast.lane.b32.xlu0 %v1659_v7, 256 }
 0x2fb   :  { %1654 = vbcast.lane.b32.xlu1 %v1648_v6, 264  ;;  %1672 = vbcast.lane.b32.xlu0 %v3169_v43, 256  ;;  %v1716_v6 = vld [vmem:[#allocation7 + $0x28] sm:$0xff] }
 0x2ff   :  { %1665 = vbcast.lane.b32.xlu1 %v1659_v7, 264  ;;  %1683 = vbcast.lane.b32.xlu0 %v3171_v58, 256  ;;  %v1723_v7 = vld [vmem:[#allocation7 + $0x60] sm:$0xff] }
 0x301   :  { %v1376_v12 = vpop.permute.xlu1 %1375  ;;  %v1365_v14 = vpop.permute.xlu0 %1364 }
 0x302   :  { %v1777_v16 = vmul.f32 %v1713_v63, %v1376_v12  ;;  %v1775_v41 = vmul.f32 %v1711_v49, %v1365_v14  ;;  %v1718_v14 = vld [vmem:[#allocation7 + $0x38] sm:$0xff] }
 0x303   :  { %1676 = vbcast.lane.b32.xlu1 %v3169_v43, 264  ;;  %1694 = vbcast.lane.b32.xlu0 %v3173_v53, 256 }
 0x304   :  { %v1840_v18 = vsel %vm140_vm0, %v1777_v16, 0.0  ;;  %v1839_v60 = vsel %vm140_vm0, %v1775_v41, 0.0 }
 0x305   :  { %v3205_v21 = vpop.permute.xlu1 %1368  ;;  %v1387_v22 = vpop.permute.xlu0 %1386  ;;  %v1841_v5 = vadd.f32 %v1840_v18, %v1839_v60  ;;  %v1724_v18 = vld [vmem:[#allocation7 + $0x68] sm:$0xff] }
 0x306   :  { %v1779_v43 = vmul.f32 %v1715_v17, %v1387_v22  ;;  %v1776_v11 = vmul.f32 %v1712_v2, %v3205_v21  ;;  %v1729_v17 = vld [vmem:[#allocation7 + $0x90] sm:$0xff] }
 0x307   :  { %1687 = vbcast.lane.b32.xlu1 %v3171_v58, 264  ;;  %1705 = vbcast.lane.b32.xlu0 %v3175_v13, 256  ;;  %v1719_v58 = vld [vmem:[#allocation7 + $0x40] sm:$0xff] }
 0x308   :  { %v1842_v3 = vsel %vm140_vm0, %v1779_v43, 0.0  ;;  %v1902_v63 = vsel %vm140_vm0, %v1776_v11, 0.0  ;;  %v1728_v11 = vld [vmem:[#allocation7 + $0x88] sm:$0xff] }
 0x309   :  { %v1380_v27 = vpop.permute.xlu1 %1379  ;;  %v1398_v28 = vpop.permute.xlu0 %1397  ;;  %v1843_v12 = vadd.f32 %v1842_v3, %v1841_v5 }
 0x30a   :  { %v1781_v61 = vmul.f32 %v1717_v57, %v1398_v28  ;;  %v1778_v10 = vmul.f32 %v1714_v0, %v1380_v27 }
 0x30b   :  { %1698 = vbcast.lane.b32.xlu1 %v3173_v53, 264 }
 0x30c   :  { %v1844_v55 = vsel %vm140_vm0, %v1781_v61, 0.0  ;;  %v1903_v27 = vsel %vm140_vm0, %v1778_v10, 0.0 }
 0x30d   :  { %v1391_v30 = vpop.permute.xlu1 %1390  ;;  %v1409_v31 = vpop.permute.xlu0 %1408  ;;  %v1845_v22 = vadd.f32 %v1844_v55, %v1843_v12  ;;  %v1904_v43 = vadd.f32 %v1903_v27, %v1902_v63  ;;  %v1732_v63 = vld [vmem:[#allocation7 + $0xa8] sm:$0xff] }
 0x30e   :  { %v1783_v4 = vmul.f32 %v1719_v58, %v1409_v31  ;;  %v1780_v15 = vmul.f32 %v1716_v6, %v1391_v30  ;;  %v1722_v30 = vld [vmem:[#allocation7 + $0x58] sm:$0xff] }
 0x30f   :  { %1709 = vbcast.lane.b32.xlu1 %v3175_v13, 264 }
 0x310   :  { %v1846_v46 = vsel %vm140_vm0, %v1783_v4, 0.0  ;;  %v1726_v4 = vld [vmem:[#allocation7 + $0x78] sm:$0xff] }
 0x311   :  { %v1402_v32 = vpop.permute.xlu1 %1401  ;;  %v1420_v36 = vpop.permute.xlu0 %1419  ;;  %v1847_v49 = vadd.f32 %v1846_v46, %v1845_v22  ;;  %v1730_v22 = vld [vmem:[#allocation7 + $0x98] sm:$0xff] }
 0x312   :  { %v1785_v51 = vmul.f32 %v1721_v1, %v1420_v36  ;;  %v1782_v31 = vmul.f32 %v1718_v14, %v1402_v32  ;;  %v1731_v32 = vld [vmem:[#allocation7 + $0xa0] sm:$0xff] }
 0x314   :  { %v1848_v36 = vsel %vm140_vm0, %v1785_v51, 0.0  ;;  %v1907_v61 = vsel %vm140_vm0, %v1782_v31, 0.0 }
 0x315   :  { %v3211_v37 = vpop.permute.xlu1 %1412  ;;  %v1431_v38 = vpop.permute.xlu0 %1430  ;;  %v1849_v58 = vadd.f32 %v1848_v36, %v1847_v49 }
 0x316   :  { %v1787_v20 = vmul.f32 %v1723_v7, %v1431_v38  ;;  %v1905_v38 = vsel %vm140_vm0, %v1780_v15, 0.0  ;;  %v1784_v16 = vmul.f32 %v1720_v23, %v3211_v37 }
 0x317   :  { %v1906_v2 = vadd.f32 %v1905_v38, %v1904_v43 }
 0x318   :  { %v1850_v41 = vsel %vm140_vm0, %v1787_v20, 0.0  ;;  %v1909_v5 = vsel %vm140_vm0, %v1784_v16, 0.0 }
 0x319   :  { %v3213_v39 = vpop.permute.xlu1 %1423  ;;  %v1442_v40 = vpop.permute.xlu0 %1441  ;;  %v1851_v3 = vadd.f32 %v1850_v41, %v1849_v58  ;;  %v1908_v55 = vadd.f32 %v1907_v61, %v1906_v2 }
 0x31a   :  { %v1789_v21 = vmul.f32 %v1725_v19, %v1442_v40  ;;  %v1786_v0 = vmul.f32 %v1722_v30, %v3213_v39  ;;  %v1735_v39 = vld [vmem:[#allocation7 + $0xc0] sm:$0xff] }
 0x31b   :  { %v1910_v46 = vadd.f32 %v1909_v5, %v1908_v55 }
 0x31c   :  { %v1852_v1 = vsel %vm140_vm0, %v1789_v21, 0.0 }
 0x31d   :  { %v3215_v42 = vpop.permute.xlu1 %1434  ;;  %v3217_v35 = vpop.permute.xlu0 %1452  ;;  %v1853_v51 = vadd.f32 %v1852_v1, %v1851_v3  ;;  %v1736_v1 = vld [vmem:[#allocation7 + $0xc8] sm:$0xff] }
 0x31e   :  { %v1791_v57 = vmul.f32 %v1727_v24, %v3217_v35  ;;  %v1733_v35 = vld [vmem:[#allocation7 + $0xb0] sm:$0xff]  ;;  %v1788_v6 = vmul.f32 %v1724_v18, %v3215_v42 }
 0x320   :  { %v1854_v7 = vsel %vm140_vm0, %v1791_v57, 0.0  ;;  %v1913_v23 = vsel %vm140_vm0, %v1788_v6, 0.0  ;;  %v1734_v57 = vld [vmem:[#allocation7 + $0xb8] sm:$0xff] }
 0x321   :  { %v3219_v59 = vpop.permute.xlu1 %1445  ;;  %v3221_v26 = vpop.permute.xlu0 %1463  ;;  %v1855_v20 = vadd.f32 %v1854_v7, %v1853_v51  ;;  %v1738_v6 = vld [vmem:[#allocation7 + $0xd8] sm:$0xff] }
 0x322   :  { %v1793_v37 = vmul.f32 %v1729_v17, %v3221_v26  ;;  %v1911_v26 = vsel %vm140_vm0, %v1786_v0, 0.0  ;;  %v1790_v19 = vmul.f32 %v1726_v4, %v3219_v59  ;;  %v1739_v59 = vld [vmem:[#allocation7 + $0xe0] sm:$0xff] }
 0x323   :  { %v1912_v36 = vadd.f32 %v1911_v26, %v1910_v46  ;;  %v1740_v26 = vld [vmem:[#allocation7 + $0xe8] sm:$0xff] }
 0x324   :  { %v1856_v15 = vsel %vm140_vm0, %v1793_v37, 0.0 }
 0x325   :  { %v3223_v34 = vpop.permute.xlu1 %1456  ;;  %v3225_v29 = vpop.permute.xlu0 %1474  ;;  %v1857_v21 = vadd.f32 %v1856_v15, %v1855_v20  ;;  %v1914_v16 = vadd.f32 %v1913_v23, %v1912_v36  ;;  %v1749_v23 = vld [vmem:[#allocation7 + $0x130] sm:$0xff] }
 0x326   :  { %v1795_v10 = vmul.f32 %v1731_v32, %v3225_v29  ;;  %v1737_v29 = vld [vmem:[#allocation7 + $0xd0] sm:$0xff]  ;;  %v1792_v24 = vmul.f32 %v1728_v11, %v3223_v34 }
 0x328   :  { %v1858_v27 = vsel %vm140_vm0, %v1795_v10, 0.0  ;;  %v1917_v43 = vsel %vm140_vm0, %v1792_v24, 0.0 }
 0x329   :  { %v3227_v44 = vpop.permute.xlu1 %1467  ;;  %v3229_v45 = vpop.permute.xlu0 %1485  ;;  %v1859_v41 = vadd.f32 %v1858_v27, %v1857_v21 }
 0x32a   :  { %v1797_v42 = vmul.f32 %v1733_v35, %v3229_v45  ;;  %v1915_v45 = vsel %vm140_vm0, %v1790_v19, 0.0  ;;  %v1794_v17 = vmul.f32 %v1730_v22, %v3227_v44  ;;  %v1743_v44 = vld [vmem:[#allocation7 + $0x100] sm:$0xff] }
 0x32b   :  { %v1916_v61 = vadd.f32 %v1915_v45, %v1914_v16 }
 0x32c   :  { %v1860_v38 = vsel %vm140_vm0, %v1797_v42, 0.0 }
 0x32d   :  { %v3231_v48 = vpop.permute.xlu1 %1478  ;;  %v3233_v50 = vpop.permute.xlu0 %1496  ;;  %v1861_v0 = vadd.f32 %v1860_v38, %v1859_v41  ;;  %v1918_v35 = vadd.f32 %v1917_v43, %v1916_v61  ;;  %v1746_v41 = vld [vmem:[#allocation7 + $0x118] sm:$0xff]  ;;  %v1748_v61 = vld [vmem:[#allocation7 + $0x128] sm:$0xff] }
 0x32e   :  { %v1799_v31 = vmul.f32 %v1735_v39, %v3233_v50  ;;  %v1741_v50 = vld [vmem:[#allocation7 + $0xf0] sm:$0xff]  ;;  %v1796_v58 = vmul.f32 %v1732_v63, %v3231_v48  ;;  %v1744_v63 = vld [vmem:[#allocation7 + $0x108] sm:$0xff] }
 0x330   :  { %v1862_v18 = vsel %vm140_vm0, %v1799_v31, 0.0  ;;  %v1921_v7 = vsel %vm140_vm0, %v1796_v58, 0.0 }
 0x331   :  { %v3235_v52 = vpop.permute.xlu1 %1489  ;;  %v3237_v62 = vpop.permute.xlu0 %1507  ;;  %v1863_v5 = vadd.f32 %v1862_v18, %v1861_v0 }
 0x332   :  { %v1801_v34 = vmul.f32 %v1737_v29, %v3237_v62  ;;  %v1919_v62 = vsel %vm140_vm0, %v1794_v17, 0.0  ;;  %v1798_v3 = vmul.f32 %v1734_v57, %v3235_v52  ;;  %v1747_v52 = vld [vmem:[#allocation7 + $0x120] sm:$0xff]  ;;  %v1742_v29 = vld [vmem:[#allocation7 + $0xf8] sm:$0xff]  ;;  %v1753_v57 = vld [vmem:[#allocation7 + $0x150] sm:$0xff] }
 0x333   :  { %v1920_v11 = vadd.f32 %v1919_v62, %v1918_v35  ;;  %v1757_v35 = vld [vmem:[#allocation7 + $0x170] sm:$0xff] }
 0x334   :  { %v1864_v4 = vsel %vm140_vm0, %v1801_v34, 0.0 }
 0x335   :  { %v3239_v47 = vpop.permute.xlu1 %1500  ;;  %v3241_v54 = vpop.permute.xlu0 %1518  ;;  %v1865_v39 = vadd.f32 %v1864_v4, %v1863_v5 }
 0x336   :  { %v1803_v32 = vmul.f32 %v1739_v59, %v3241_v54  ;;  %v1745_v54 = vld [vmem:[#allocation7 + $0x110] sm:$0xff]  ;;  %v1800_v10 = vmul.f32 %v1736_v1, %v3239_v47  ;;  %v1922_v47 = vadd.f32 %v1921_v7, %v1920_v11 }
 0x338   :  { %v1866_v55 = vsel %vm140_vm0, %v1803_v32, 0.0 }
 0x339   :  { %v3243_v33 = vpop.permute.xlu1 %1511  ;;  %v3245_v56 = vpop.permute.xlu0 %1529  ;;  %v1867_v22 = vadd.f32 %v1866_v55, %v1865_v39  ;;  %v1752_v55 = vld [vmem:[#allocation7 + $0x148] sm:$0xff] }
 0x33a   :  { %v1805_v48 = vmul.f32 %v1741_v50, %v3245_v56  ;;  %v1923_v56 = vsel %vm140_vm0, %v1798_v3, 0.0  ;;  %v1802_v42 = vmul.f32 %v1738_v6, %v3243_v33  ;;  %v1751_v33 = vld [vmem:[#allocation7 + $0x140] sm:$0xff] }
 0x33b   :  { %v1924_v36 = vadd.f32 %v1923_v56, %v1922_v47 }
 0x33c   :  { %v1868_v46 = vsel %vm140_vm0, %v1805_v48, 0.0  ;;  %v1750_v48 = vld [vmem:[#allocation7 + $0x138] sm:$0xff] }
 0x33d   :  { %v3247_v53 = vpop.permute.xlu1 %1522  ;;  %v3249_v13 = vpop.permute.xlu0 %1540  ;;  %v1869_v21 = vadd.f32 %v1868_v46, %v1867_v22  ;;  %v1761_v46 = vld [vmem:[#allocation7 + $0x190] sm:$0xff] }
 0x33e   :  { %v1807_v51 = vmul.f32 %v1743_v44, %v3249_v13  ;;  %v1925_v13 = vsel %vm140_vm0, %v1800_v10, 0.0  ;;  %v1804_v24 = vmul.f32 %v1740_v26, %v3247_v53 }
 0x33f   :  { %v1926_v53 = vadd.f32 %v1925_v13, %v1924_v36  ;;  %v1756_v13 = vld [vmem:[#allocation7 + $0x168] sm:$0xff] }
 0x340   :  { %v1870_v27 = vsel %vm140_vm0, %v1807_v51, 0.0 }
 0x341   :  { %v3254_v8 = vpop.permute.xlu1 %1533  ;;  %v3256_v9 = vpop.permute.xlu0 %1551  ;;  %v1871_v16 = vadd.f32 %v1870_v27, %v1869_v21 }
 0x342   :  { %v1809_v20 = vmul.f32 %v1745_v54, %v3256_v9  ;;  %v1927_v9 = vsel %vm140_vm0, %v1802_v42, 0.0  ;;  %v1806_v17 = vmul.f32 %v1742_v29, %v3254_v8  ;;  %v1755_v8 = vld [vmem:[#allocation7 + $0x160] sm:$0xff] }
 0x343   :  { %v1928_v18 = vadd.f32 %v1927_v9, %v1926_v53  ;;  %v1758_v9 = vld [vmem:[#allocation7 + $0x178] sm:$0xff] }
 0x344   :  { %v1872_v38 = vsel %vm140_vm0, %v1809_v20, 0.0 }
 0x345   :  { %v3261_v25 = vpop.permute.xlu1 %1544  ;;  %v3263_v28 = vpop.permute.xlu0 %1562  ;;  %v1873_v32 = vadd.f32 %v1872_v38, %v1871_v16 }
 0x346   :  { %v1811_v31 = vmul.f32 %v1747_v52, %v3263_v28  ;;  %v1929_v28 = vsel %vm140_vm0, %v1804_v24, 0.0  ;;  %v1808_v50 = vmul.f32 %v1744_v63, %v3261_v25  ;;  %v1763_v24 = vld [vmem:[#allocation7 + $0x1a0] sm:$0xff] }
 0x347   :  { %v1930_v4 = vadd.f32 %v1929_v28, %v1928_v18  ;;  %v1767_v28 = vld [vmem:[#allocation7 + $0x1c0] sm:$0xff] }
 0x348   :  { %v1874_v43 = vsel %vm140_vm0, %v1811_v31, 0.0 }
 0x349   :  { %v3272_v60 = vpop.permute.xlu1 %1555  ;;  %v3274_v40 = vpop.permute.xlu0 %1573  ;;  %v1875_v25 = vadd.f32 %v1874_v43, %v1873_v32 }
 0x34a   :  { %v1813_v34 = vmul.f32 %v1749_v23, %v3274_v40  ;;  %v1931_v40 = vsel %vm140_vm0, %v1806_v17, 0.0  ;;  %v1810_v44 = vmul.f32 %v1746_v41, %v3272_v60  ;;  %v1759_v60 = vld [vmem:[#allocation7 + $0x180] sm:$0xff]  ;;  %v1760_v41 = vld [vmem:[#allocation7 + $0x188] sm:$0xff] }
 0x34b   :  { %v1932_v7 = vadd.f32 %v1931_v40, %v1930_v4 }
 0x34c   :  { %v1876_v62 = vsel %vm140_vm0, %v1813_v34, 0.0 }
 0x34d   :  { %v3284_v12 = vpop.permute.xlu1 %1566  ;;  %v3286_v14 = vpop.permute.xlu0 %1584  ;;  %v1877_v10 = vadd.f32 %v1876_v62, %v1875_v25  ;;  %v1764_v25 = vld [vmem:[#allocation7 + $0x1a8] sm:$0xff] }
 0x34e   :  { %v1815_v58 = vmul.f32 %v1751_v33, %v3286_v14  ;;  %v1933_v14 = vsel %vm140_vm0, %v1808_v50, 0.0  ;;  %v1812_v5 = vmul.f32 %v1748_v61, %v3284_v12  ;;  %v1754_v12 = vld [vmem:[#allocation7 + $0x158] sm:$0xff] }
 0x34f   :  { %v1934_v56 = vadd.f32 %v1933_v14, %v1932_v7 }
 0x350   :  { %v1878_v6 = vsel %vm140_vm0, %v1815_v58, 0.0  ;;  %v1937_v20 = vsel %vm140_vm0, %v1812_v5, 0.0 }
 0x351   :  { %v3296_v49 = vpop.permute.xlu1 %1577  ;;  %v3298_v30 = vpop.permute.xlu0 %1595  ;;  %v1879_v42 = vadd.f32 %v1878_v6, %v1877_v10  ;;  %v1766_v10 = vld [vmem:[#allocation7 + $0x1b8] sm:$0xff] }
 0x352   :  { %v1817_v3 = vmul.f32 %v1753_v57, %v3298_v30  ;;  %v1935_v30 = vsel %vm140_vm0, %v1810_v44, 0.0  ;;  %v1814_v39 = vmul.f32 %v1750_v48, %v3296_v49 }
 0x353   :  { %v1936_v29 = vadd.f32 %v1935_v30, %v1934_v56 }
 0x354   :  { %v1880_v26 = vsel %vm140_vm0, %v1817_v3, 0.0  ;;  %v1939_v31 = vsel %vm140_vm0, %v1814_v39, 0.0 }
 0x355   :  { %v3308_v37 = vpop.permute.xlu1 %1588  ;;  %v3310_v2 = vpop.permute.xlu0 %1606  ;;  %v1881_v23 = vadd.f32 %v1880_v26, %v1879_v42  ;;  %v1938_v63 = vadd.f32 %v1937_v20, %v1936_v29  ;;  %v1768_v26 = vld [vmem:[#allocation7 + $0x1c8] sm:$0xff]  ;;  %v1773_v29 = vld [vmem:[#allocation7 + $0x1f0] sm:$0xff] }
 0x356   :  { %v1819_v54 = vmul.f32 %v1755_v8, %v3310_v2  ;;  %v1816_v2 = vmul.f32 %v1752_v55, %v3308_v37  ;;  %v1765_v37 = vld [vmem:[#allocation7 + $0x1b0] sm:$0xff]  ;;  %v1762_v8 = vld [vmem:[#allocation7 + $0x198] sm:$0xff]  ;;  %v1771_v55 = vld [vmem:[#allocation7 + $0x1e0] sm:$0xff] }
 0x357   :  { %v1940_v53 = vadd.f32 %v1939_v31, %v1938_v63 }
 0x358   :  { %v1882_v47 = vsel %vm140_vm0, %v1819_v54, 0.0  ;;  %v1941_v17 = vsel %vm140_vm0, %v1816_v2, 0.0 }
 0x359   :  { %v3320_v19 = vpop.permute.xlu1 %1599  ;;  %v1618_v15 = vpop.permute.xlu0 %1617  ;;  %v1883_v33 = vadd.f32 %v1882_v47, %v1881_v23  ;;  %v1942_v32 = vadd.f32 %v1941_v17, %v1940_v53 }
 0x35a   :  { %v1821_v52 = vmul.f32 %v1757_v35, %v1618_v15  ;;  %v1818_v15 = vmul.f32 %v1754_v12, %v3320_v19 }
 0x35c   :  { %v1884_v36 = vsel %vm140_vm0, %v1821_v52, 0.0  ;;  %v1943_v50 = vsel %vm140_vm0, %v1818_v15, 0.0 }
 0x35d   :  { %v3330_v59 = vpop.permute.xlu1 %1610  ;;  %v1629_v45 = vpop.permute.xlu0 %1628  ;;  %v1885_v16 = vadd.f32 %v1884_v36, %v1883_v33  ;;  %v1944_v3 = vadd.f32 %v1943_v50, %v1942_v32 }
 0x35e   :  { %v1823_v22 = vmul.f32 %v1759_v60, %v1629_v45  ;;  %v1820_v45 = vmul.f32 %v1756_v13, %v3330_v59 }
 0x360   :  { %v1886_v38 = vsel %vm140_vm0, %v1823_v22, 0.0  ;;  %v1945_v59 = vsel %vm140_vm0, %v1820_v45, 0.0  ;;  %v1770_v22 = vld [vmem:[#allocation7 + $0x1d8] sm:$0xff] }
 0x361   :  { %v1622_v0 = vpop.permute.xlu1 %1621  ;;  %v1640_v1 = vpop.permute.xlu0 %1639  ;;  %v1887_v61 = vadd.f32 %v1886_v38, %v1885_v16  ;;  %v1946_v54 = vadd.f32 %v1945_v59, %v1944_v3 }
 0x362   :  { %v1825_v21 = vmul.f32 %v1761_v46, %v1640_v1  ;;  %v1822_v43 = vmul.f32 %v1758_v9, %v1622_v0  ;;  %v1769_v1 = vld [vmem:[#allocation7 + $0x1d0] sm:$0xff] }
 0x364   :  { %v1888_v58 = vsel %vm140_vm0, %v1825_v21, 0.0  ;;  %v1947_v0 = vsel %vm140_vm0, %v1822_v43, 0.0 }
 0x365   :  { %v1633_v51 = vpop.permute.xlu1 %1632  ;;  %v1651_v11 = vpop.permute.xlu0 %1650  ;;  %v1889_v4 = vadd.f32 %v1888_v58, %v1887_v61  ;;  %v1948_v30 = vadd.f32 %v1947_v0, %v1946_v54 }
 0x366   :  { %v1827_v34 = vmul.f32 %v1763_v24, %v1651_v11  ;;  %v1824_v40 = vmul.f32 %v1760_v41, %v1633_v51 }
 0x368   :  { %v1890_v44 = vsel %vm140_vm0, %v1827_v34, 0.0  ;;  %v1949_v60 = vsel %vm140_vm0, %v1824_v40, 0.0 }
 0x369   :  { %v1644_v27 = vpop.permute.xlu1 %1643  ;;  %v1662_v49 = vpop.permute.xlu0 %1661  ;;  %v1891_v7 = vadd.f32 %v1890_v44, %v1889_v4  ;;  %v1950_v2 = vadd.f32 %v1949_v60, %v1948_v30 }
 0x36a   :  { %v1829_v18 = vmul.f32 %v1765_v37, %v1662_v49  ;;  %v1826_v14 = vmul.f32 %v1762_v8, %v1644_v27  ;;  %v1772_v37 = vld [vmem:[#allocation7 + $0x1e8] sm:$0xff] }
 0x36c   :  { %v1892_v5 = vsel %vm140_vm0, %v1829_v18, 0.0  ;;  %v1951_v42 = vsel %vm140_vm0, %v1826_v14, 0.0 }
 0x36d   :  { %v1655_v57 = vpop.permute.xlu1 %1654  ;;  %v1673_v19 = vpop.permute.xlu0 %1672  ;;  %v1893_v39 = vadd.f32 %v1892_v5, %v1891_v7  ;;  %v1952_v27 = vadd.f32 %v1951_v42, %v1950_v2 }
 0x36e   :  { %v1831_v62 = vmul.f32 %v1767_v28, %v1673_v19  ;;  %v1828_v51 = vmul.f32 %v1764_v25, %v1655_v57  ;;  %v1774_v28 = vld [vmem:[#allocation7 + $0x1f8] sm:$0xff] }
 0x370   :  { %v1894_v11 = vsel %vm140_vm0, %v1831_v62, 0.0  ;;  %v1953_v23 = vsel %vm140_vm0, %v1828_v51, 0.0 }
 0x371   :  { %v1666_v48 = vpop.permute.xlu1 %1665  ;;  %v1684_v35 = vpop.permute.xlu0 %1683  ;;  %v1895_v47 = vadd.f32 %v1894_v11, %v1893_v39  ;;  %v1954_v33 = vadd.f32 %v1953_v23, %v1952_v27 }
 0x372   :  { %v1833_v6 = vmul.f32 %v1769_v1, %v1684_v35  ;;  %v1830_v12 = vmul.f32 %v1766_v10, %v1666_v48 }
 0x374   :  { %v1896_v46 = vsel %vm140_vm0, %v1833_v6, 0.0  ;;  %v1955_v36 = vsel %vm140_vm0, %v1830_v12, 0.0 }
 0x375   :  { %v1677_v52 = vpop.permute.xlu1 %1676  ;;  %v1695_v56 = vpop.permute.xlu0 %1694  ;;  %v1897_v49 = vadd.f32 %v1896_v46, %v1895_v47  ;;  %v1956_v38 = vadd.f32 %v1955_v36, %v1954_v33 }
 0x376   :  { %v1835_v20 = vmul.f32 %v1771_v55, %v1695_v56  ;;  %v1832_v13 = vmul.f32 %v1768_v26, %v1677_v52 }
 0x378   :  { %v1898_v24 = vsel %vm140_vm0, %v1835_v20, 0.0  ;;  %v1957_v17 = vsel %vm140_vm0, %v1832_v13, 0.0 }
 0x379   :  { %v1688_v31 = vpop.permute.xlu1 %1687  ;;  %v1706_v15 = vpop.permute.xlu0 %1705  ;;  %v1899_v9 = vadd.f32 %v1898_v24, %v1897_v49  ;;  %v1958_v57 = vadd.f32 %v1957_v17, %v1956_v38 }
 0x37a   :  { %v1834_v21 = vmul.f32 %v1770_v22, %v1688_v31  ;;  %v1837_v63 = vmul.f32 %v1773_v29, %v1706_v15 }
 0x37c   :  { %v1900_v45 = vsel %vm140_vm0, %v1837_v63, 0.0  ;;  %v1959_v16 = vsel %vm140_vm0, %v1834_v21, 0.0 }
 0x37d   :  { %v1901_v34 = vadd.f32 %v1900_v45, %v1899_v9  ;;  %v1699_v53 = vpop.permute.xlu1 %1698  ;;  %v1960_v50 = vadd.f32 %v1959_v16, %v1958_v57 }
 0x37e   :  { %v1836_v41 = vmul.f32 %v1772_v37, %v1699_v53 }
 0x37f   :  { %2178 = vmatprep.mubr.msk.f32.mxu0 %vm140_vm0, %v1901_v34 }
 0x380   :  { %v1961_v19 = vsel %vm140_vm0, %v1836_v41, 0.0 }
 0x381   :  { %v1710_v43 = vpop.permute.xlu1 %1709  ;;  %v1962_v18 = vadd.f32 %v1961_v19, %v1960_v50 }
 0x382   :  { %v1838_v58 = vmul.f32 %v1774_v28, %v1710_v43 }
 0x384   :  { %v1963_v32 = vsel %vm140_vm0, %v1838_v58, 0.0 }
 0x385   :  { %v1964_v61 = vadd.f32 %v1963_v32, %v1962_v18 }
 0x387   :  { %2179 = vmatmul.mubr.msk.f32.vlgmr.msra.gmra.mrb[0].mxu0 %vm140_vm0, %v1964_v61 }
 0x388   :  { %2417 = shalt.err (!%p2414_p4)
}
 0x389   :  { %s2418_s0 = scalar_lea.hbm %s3421_s12, 64 }
 0x38a   :  { %p2419_p5 = scmp.ne.s32.totalorder %s3421_s12, %s2418_s0  ;;  %p2422_p6 = scmp.lt.u32.totalorder %s2418_s0, %s3421_s12 }
 0x38c   :  { %p2424_p7 = pnand %p2422_p6, %p2419_p5 }
 0x38e   :  { %2427 = shalt.err (!%p2424_p7)
}
 0x38f   :  { %2086 = dma.vmem_to_hbm [thread:$0]  %s2084_s13, 64, %s3421_s12, [#allocation16]  }
 0x390   :  { %s2473_s25 = smov [#allocation14]  }
 0x391   :  { %s2068_s8 = sshll.u32 %s2473_s25, 4  ;;  %s2069_s8 = int_to_ptr.vmem [resolvable:$true] %s2068_s8 }
 0x392   :  { %s2428_s18 = scalar_lea.vmem %s2069_s8, 256  ;;  %p2433_p9 = scmp.lt.s32.totalorder %s2069_s8, %s2069_s8 }
 0x393   :  { %p2429_p8 = scmp.ne.s32.totalorder %s2069_s8, %s2428_s18  ;;  %p2434_p10 = scmp.lt.s32.totalorder %s2428_s18, %s2428_s18 }
 0x395   :  { %p2435_p11 = por %p2434_p10, %p2433_p9 }
 0x397   :  { %p2436_p12 = pnand %p2435_p11, %p2429_p8 }
 0x45a   :  { %v2180_v8 = vpop.f32.mrb[0].mxu0 }
 0x45b   :  { %2247 = vtanh.f32 %v2180_v8  ;;  %v2041_v1 = vpop.f32.mrb[1].mxu0 }
 0x45c   :  { %2249 = vtanh.f32 %v2041_v1 }
 0x465   :  { %v2248_v59 = vpop.eup %2247 }
 0x466   :  { %v2250_v40 = vpop.eup %2249  ;;  %2053 = vst.msk [vmem:[#allocation14 + $0x8] sm:$0xff] %vm140_vm0, %v2248_v59 }
 0x467   :  { %2052 = vst.msk [vmem:[#allocation14] sm:$0xff] %vm140_vm0, %v2250_v40 }
 0x468   :  { %2439 = shalt.err (!%p2436_p12)
}
 0x469   :  { %s2440_s27 = scalar_lea.hbm %s3419_s10, 256 }
 0x46a   :  { %p2441_p13 = scmp.ne.s32.totalorder %s3419_s10, %s2440_s27  ;;  %p2444_p0 = scmp.lt.u32.totalorder %s2440_s27, %s3419_s10 }
 0x46c   :  { %p2446_p1 = pnand %p2444_p0, %p2441_p13 }
 0x46e   :  { %2449 = shalt.err (!%p2446_p1)
}
 0x46f   :  { %2074 = dma.vmem_to_hbm [thread:$0]  %s2069_s8, 256, %s3419_s10, [#allocation4], %s2464_s20, %s2464_s20, %s2465_s21  }
 0x470   :  { %2458 = dma.done.wait [#allocation4], 256  }
 0x471   :  { %2459 = vsyncadd [#allocation4], 4294967040 }
 0x472   :  { %2460 = dma.done.wait [#allocation16], 64  }
 0x473   :  { %2461 = vsyncadd [#allocation16], 4294967232 }
 0x474   :  { %2099 = vsyncpa [#allocation3], 1 }
 0x475   :  { %2100 = vsyncpa [#allocation6], 1 }
 0x476   :  { %2101 = vsyncpa [#allocation9], 1 }
 0x477   :  { %2102 = vsyncpa [#allocation12], 1 }
 0x478   :  { %2103 = vsyncpa [#allocation4], 1 }
 0x479   :  { %2104 = vsyncpa [#allocation16], 1 }

</bundles_post_ra>
